<compile_context>
chip_gen: v7x
topology: tpu7x:2x2x1
jax: 0.10.0
libtpu: 0.0.40
codegen_flags: <defaults>
</compile_context>

<pallas_src>
import functools

import jax
import jax.numpy as jnp
from jax import lax
from jax.experimental import pallas as pl
from jax.experimental.pallas import tpu as pltpu

H = 100            # logical hidden size (nn.LSTM(1, 100))
HP = 128           # hidden size padded to one 128-lane block per gate
G4 = 4 * HP        # packed gate width, gate order [i | f | o | g]
MAX_BP = 256       # max batch rows per grid block (multiple of 8)


def _lstm_cell(gates, c):
    """LSTM cell nonlinearity on lane-padded gates.

    gates: (BP, 4*HP), gate order [i | f | o | g], 128-aligned slices.
    c:     (BP, HP).
    """
    ifo = jax.nn.sigmoid(gates[:, :3 * HP])          # one contiguous EUP pass
    g = jnp.tanh(gates[:, 3 * HP:])
    i = ifo[:, 0 * HP:1 * HP]
    f = ifo[:, 1 * HP:2 * HP]
    o = ifo[:, 2 * HP:3 * HP]
    c_new = f * c + i * g
    h_new = o * jnp.tanh(c_new)
    return h_new, c_new


def _lstm_cell_first(gates):
    """First LSTM step with h == c == 0: the forget-gate term drops out."""
    i = jax.nn.sigmoid(gates[:, 0 * HP:1 * HP])
    o = jax.nn.sigmoid(gates[:, 2 * HP:3 * HP])
    g = jnp.tanh(gates[:, 3 * HP:])
    c_new = i * g
    h_new = o * jnp.tanh(c_new)
    return h_new, c_new


def net_kernel(T,
               x_ref, wih_e_ref, whh_e_ref, b_e_ref,
               wih_d_ref, whh_d_ref, b_d_ref,
               w_tail_ref, b_tail_ref,
               o_ref):
    # Hoist only the small operands; the (HP, G4) recurrent weights are read
    # at the use site so their live ranges don't span the whole unroll
    # (each one alone is 64 vregs == the entire register file).
    wih_e = wih_e_ref[...]                           # (1, G4)
    b_e = b_e_ref[...]                               # (1, G4)

    # ---- encoder LSTM, fully unrolled (T static & small). We only need the
    #      final hidden state since the forward takes relu(out)[:, -1:]. ----
    # t == 0: h == c == 0, so the recurrent matmul and f*c are skipped.
    gates = x_ref[:, 0:1] * wih_e + b_e
    h, c = _lstm_cell_first(gates)
    for t in range(1, T):
        # TODO(synk): if the bundle shows Mosaic re-pushing whh_e into the MXU
        # every step, keep the RHS stationary with pltpu.matmul_push_rhs (once
        # before the loop) + matmul_acc_lhs / matmul_pop per step.
        gates = (x_ref[:, t:t + 1] * wih_e + b_e
                 + jnp.dot(h, whh_e_ref[...],
                           preferred_element_type=jnp.float32))
        h, c = _lstm_cell(gates, c)

    # relu + last timestep + repeat(1, 2, 1): same decoder input at both steps.
    d = jnp.maximum(h, 0.0)                          # (BP, HP)
    xg_dec = (jnp.dot(d, wih_d_ref[...], preferred_element_type=jnp.float32)
              + b_d_ref[...])                        # (BP, G4)

    w_tail = w_tail_ref[...]                         # (1, HP)
    b_tail = b_tail_ref[...]                         # (1, 1)

    # ---- decoder LSTM (2 static steps) + relu + tail Linear(100, 1) ----
    # step 0: h == c == 0 -> gates are just the input projection, no matmul.
    h, c = _lstm_cell_first(xg_dec)
    hr = jnp.maximum(h, 0.0)
    # tail: VPU multiply + XLU lane reduction instead of an N=1 MXU matmul
    y0 = jnp.sum(hr * w_tail, axis=-1, keepdims=True) + b_tail

    # step 1: full cell.
    gates = xg_dec + jnp.dot(h, whh_d_ref[...],
                             preferred_element_type=jnp.float32)
    h, c = _lstm_cell(gates, c)
    hr = jnp.maximum(h, 0.0)
    y1 = jnp.sum(hr * w_tail, axis=-1, keepdims=True) + b_tail

    o_ref[...] = jnp.concatenate([y0, y1], axis=1)   # one (BP, 2) store


def _pack_lstm_w(w, in_pad):
    """PyTorch LSTM weight (4H, in), gate order [i,f,g,o] -> transposed,
    gate-reordered [i,f,o,g], zero-padded (in_pad, 4*HP)."""
    i, f, g, o = jnp.split(w.astype(jnp.float32), 4, axis=0)   # each (H, in)

    def pg(m):
        mt = m.T                                               # (in, H)
        return jnp.pad(mt, ((0, in_pad - mt.shape[0]), (0, HP - H)))

    return jnp.concatenate([pg(i), pg(f), pg(o), pg(g)], axis=1)


def _pack_lstm_b(b_ih, b_hh):
    b = (b_ih + b_hh).astype(jnp.float32)
    i, f, g, o = jnp.split(b, 4)
    pg = lambda v: jnp.pad(v, (0, HP - H))
    return jnp.concatenate([pg(i), pg(f), pg(o), pg(g)])[None, :]   # (1, 4*HP)


def net_forward(x, params):
    """x: (B, T, 1) float32. Returns (B, 2, 1) float32."""
    B, T, _ = x.shape

    # Batch tiling: one block as large as possible (fills MXU rows, fewest
    # grid steps); multiple 256-row blocks only for large batches, where the
    # ("parallel",) axis also shards them across TensorCores on v7x.
    Bpad8 = pl.cdiv(B, 8) * 8
    if Bpad8 <= MAX_BP:
        BP, nb = Bpad8, 1
    else:
        nb = pl.cdiv(Bpad8, MAX_BP)
        BP = pl.cdiv(pl.cdiv(Bpad8, nb), 8) * 8
    Bpad = nb * BP
    T_pad = pl.cdiv(T, 128) * 128

    # lane-dense scalar sequence: (Bpad, T_pad), x_p[b, t] = x[b, t, 0]
    x_p = jnp.pad(x[:, :, 0].astype(jnp.float32),
                  ((0, Bpad - B), (0, T_pad - T)))

    wih_e = _pack_lstm_w(params["w_ih_enc"], 1)                      # (1, 512)
    whh_e = _pack_lstm_w(params["w_hh_enc"], HP)                     # (128, 512)
    b_e = _pack_lstm_b(params["b_ih_enc"], params["b_hh_enc"])       # (1, 512)
    wih_d = _pack_lstm_w(params["w_ih_dec"], HP)                     # (128, 512)
    whh_d = _pack_lstm_w(params["w_hh_dec"], HP)                     # (128, 512)
    b_d = _pack_lstm_b(params["b_ih_dec"], params["b_hh_dec"])       # (1, 512)
    w_t = jnp.pad(params["w_tail"].astype(jnp.float32),
                  ((0, 0), (0, HP - H)))                             # (1, 128)
    b_t = params["b_tail"].astype(jnp.float32).reshape(1, 1)         # (1, 1)

    full = lambda shape: pl.BlockSpec(shape, lambda b: (0, 0))
    out = pl.pallas_call(
        functools.partial(net_kernel, T),
        out_shape=jax.ShapeDtypeStruct((Bpad, 2), jnp.float32),
        grid=(nb,),
        in_specs=[
            pl.BlockSpec((BP, T_pad), lambda b: (b, 0)),   # x, per batch block
            full((1, G4)),     # wih_e
            full((HP, G4)),    # whh_e
            full((1, G4)),     # b_e
            full((HP, G4)),    # wih_d
            full((HP, G4)),    # whh_d
            full((1, G4)),     # b_d
            full((1, HP)),     # w_tail
            full((1, 1)),      # b_tail
        ],
        out_specs=pl.BlockSpec((BP, 2), lambda b: (b, 0)),
        compiler_params=pltpu.CompilerParams(
            dimension_semantics=("parallel",)),   # shard batch blocks across TCs
    )(x_p, wih_e, whh_e, b_e, wih_d, whh_d, b_d, w_t, b_t)

    return out[:B].reshape(B, 2, 1)


def net_reference(x, params):
    """Pure-JAX reference with identical semantics (for validation)."""
    def cell(g, c):
        i = jax.nn.sigmoid(g[:, 0 * H:1 * H])
        f = jax.nn.sigmoid(g[:, 1 * H:2 * H])
        gg = jnp.tanh(g[:, 2 * H:3 * H])
        o = jax.nn.sigmoid(g[:, 3 * H:4 * H])
        c_new = f * c + i * gg
        return o * jnp.tanh(c_new), c_new

    def lstm(inp, w_ih, w_hh, b_ih, b_hh):
        Bq = inp.shape[0]

        def step(carry, x_t):
            h, c = carry
            g = x_t @ w_ih.T + h @ w_hh.T + b_ih + b_hh
            h, c = cell(g, c)
            return (h, c), h

        h0 = jnp.zeros((Bq, H), jnp.float32)
        (_, _), hs = lax.scan(step, (h0, h0), jnp.transpose(inp, (1, 0, 2)))
        return jnp.transpose(hs, (1, 0, 2))

    y = lstm(x, params["w_ih_enc"], params["w_hh_enc"],
             params["b_ih_enc"], params["b_hh_enc"])
    y = jnp.maximum(y, 0.0)
    y = jnp.repeat(y[:, -1:, :], 2, axis=1)
    y = lstm(y, params["w_ih_dec"], params["w_hh_dec"],
             params["b_ih_dec"], params["b_hh_dec"])
    y = jnp.maximum(y, 0.0)
    y = y @ params["w_tail"].T + params["b_tail"]
    return y


def init_params(key):
    """Deterministic init, PyTorch-style U(-1/sqrt(H), 1/sqrt(H)). PyTorch shapes:
    W_ih: (4H, in), W_hh: (4H, H), biases: (4H,); tail W: (1, H), b: (1,)."""
    s = 1.0 / jnp.sqrt(jnp.float32(H))
    ks = jax.random.split(key, 10)
    u = lambda k, shape: jax.random.uniform(k, shape, jnp.float32, -s, s)
    return {
        "w_ih_enc": u(ks[0], (4 * H, 1)),
        "w_hh_enc": u(ks[1], (4 * H, H)),
        "b_ih_enc": u(ks[2], (4 * H,)),
        "b_hh_enc": u(ks[3], (4 * H,)),
        "w_ih_dec": u(ks[4], (4 * H, H)),
        "w_hh_dec": u(ks[5], (4 * H, H)),
        "b_ih_dec": u(ks[6], (4 * H,)),
        "b_hh_dec": u(ks[7], (4 * H,)),
        "w_tail": u(ks[8], (1, H)),
        "b_tail": u(ks[9], (1,)),
    }


if __name__ == "__main__":
    key = jax.random.PRNGKey(0)
    k_param, k_x = jax.random.split(key)
    params = init_params(k_param)

    B, T = 2, 8                                # small sequence of scalar features
    x = jax.random.normal(k_x, (B, T, 1), jnp.float32)

    y = jax.block_until_ready(net_forward(x, params))
    assert y.shape == (B, 2, 1), y.shape

    y_ref = jax.block_until_ready(net_reference(x, params))
    assert jnp.allclose(y, y_ref, rtol=1e-5, atol=1e-5), (y, y_ref)

    print("KERNEL_OK")
</pallas_src>

<mosaic_0001>
module attributes {stable_mosaic.version = 11 : i64} {
  func.func @net_kernel(%arg0: i32, %arg1: memref<8x128xf32, #tpu.memory_space<vmem>>, %arg2: memref<1x512xf32, #tpu.memory_space<vmem>>, %arg3: memref<128x512xf32, #tpu.memory_space<vmem>>, %arg4: memref<1x512xf32, #tpu.memory_space<vmem>>, %arg5: memref<128x512xf32, #tpu.memory_space<vmem>>, %arg6: memref<128x512xf32, #tpu.memory_space<vmem>>, %arg7: memref<1x512xf32, #tpu.memory_space<vmem>>, %arg8: memref<1x128xf32, #tpu.memory_space<vmem>>, %arg9: memref<1x1xf32, #tpu.memory_space<vmem>>, %arg10: memref<8x2xf32, #tpu.memory_space<vmem>>) attributes {dimension_semantics = [#tpu.dimension_semantics<parallel>], iteration_bounds = array<i64: 1>, scalar_prefetch = 0 : i64, scratch_operands = 0 : i64, tpu.core_type = #tpu.core_type<tc>, window_params = [{transform_indices = @transform_0, window_bounds = array<i64: 8, 128>}, {pipeline_mode = #tpu.pipeline_mode<synchronous>, transform_indices = @transform_1, window_bounds = array<i64: 1, 512>}, {pipeline_mode = #tpu.pipeline_mode<synchronous>, transform_indices = @transform_2, window_bounds = array<i64: 128, 512>}, {pipeline_mode = #tpu.pipeline_mode<synchronous>, transform_indices = @transform_3, window_bounds = array<i64: 1, 512>}, {pipeline_mode = #tpu.pipeline_mode<synchronous>, transform_indices = @transform_4, window_bounds = array<i64: 128, 512>}, {pipeline_mode = #tpu.pipeline_mode<synchronous>, transform_indices = @transform_5, window_bounds = array<i64: 128, 512>}, {pipeline_mode = #tpu.pipeline_mode<synchronous>, transform_indices = @transform_6, window_bounds = array<i64: 1, 512>}, {pipeline_mode = #tpu.pipeline_mode<synchronous>, transform_indices = @transform_7, window_bounds = array<i64: 1, 128>}, {pipeline_mode = #tpu.pipeline_mode<synchronous>, transform_indices = @transform_8, window_bounds = array<i64: 1, 1>}, {transform_indices = @transform_9, window_bounds = array<i64: 8, 2>}]} {
    %c0 = arith.constant 0 : index
    %c0_0 = arith.constant 0 : index
    %0 = vector.load %arg2[%c0, %c0_0] : memref<1x512xf32, #tpu.memory_space<vmem>>, vector<1x512xf32>
    %c0_1 = arith.constant 0 : index
    %c0_2 = arith.constant 0 : index
    %1 = vector.load %arg4[%c0_1, %c0_2] : memref<1x512xf32, #tpu.memory_space<vmem>>, vector<1x512xf32>
    %c0_3 = arith.constant 0 : index
    %c0_4 = arith.constant 0 : index
    %2 = vector.load %arg1[%c0_3, %c0_4] : memref<8x128xf32, #tpu.memory_space<vmem>>, vector<8x1xf32>
    %3 = vector.broadcast %2 : vector<8x1xf32> to vector<8x512xf32>
    %4 = vector.broadcast %0 : vector<1x512xf32> to vector<8x512xf32>
    %5 = arith.mulf %3, %4 : vector<8x512xf32>
    %6 = vector.broadcast %1 : vector<1x512xf32> to vector<8x512xf32>
    %7 = arith.addf %5, %6 : vector<8x512xf32>
    %8 = vector.extract_strided_slice %7 {offsets = [0, 0], sizes = [8, 128], strides = [1, 1]} : vector<8x512xf32> to vector<8x128xf32>
    %9 = arith.negf %8 : vector<8x128xf32>
    %10 = math.exp %9 : vector<8x128xf32>
    %cst = arith.constant 1.000000e+00 : f32
    %11 = vector.broadcast %cst : f32 to vector<8x128xf32>
    %12 = arith.addf %11, %10 : vector<8x128xf32>
    %13 = arith.divf %11, %12 : vector<8x128xf32>
    %14 = vector.extract_strided_slice %7 {offsets = [0, 256], sizes = [8, 128], strides = [1, 1]} : vector<8x512xf32> to vector<8x128xf32>
    %15 = arith.negf %14 : vector<8x128xf32>
    %16 = math.exp %15 : vector<8x128xf32>
    %cst_5 = arith.constant 1.000000e+00 : f32
    %17 = vector.broadcast %cst_5 : f32 to vector<8x128xf32>
    %18 = arith.addf %17, %16 : vector<8x128xf32>
    %19 = arith.divf %17, %18 : vector<8x128xf32>
    %20 = vector.extract_strided_slice %7 {offsets = [0, 384], sizes = [8, 128], strides = [1, 1]} : vector<8x512xf32> to vector<8x128xf32>
    %21 = math.tanh %20 : vector<8x128xf32>
    %22 = arith.mulf %13, %21 : vector<8x128xf32>
    %23 = math.tanh %22 : vector<8x128xf32>
    %24 = arith.mulf %19, %23 : vector<8x128xf32>
    %c0_6 = arith.constant 0 : index
    %c1 = arith.constant 1 : index
    %25 = vector.load %arg1[%c0_6, %c1] : memref<8x128xf32, #tpu.memory_space<vmem>>, vector<8x1xf32>
    %26 = vector.broadcast %25 : vector<8x1xf32> to vector<8x512xf32>
    %27 = vector.broadcast %0 : vector<1x512xf32> to vector<8x512xf32>
    %28 = arith.mulf %26, %27 : vector<8x512xf32>
    %29 = vector.broadcast %1 : vector<1x512xf32> to vector<8x512xf32>
    %30 = arith.addf %28, %29 : vector<8x512xf32>
    %c0_7 = arith.constant 0 : index
    %c0_8 = arith.constant 0 : index
    %31 = vector.load %arg3[%c0_7, %c0_8] : memref<128x512xf32, #tpu.memory_space<vmem>>, vector<128x512xf32>
    %cst_9 = arith.constant dense<0.000000e+00> : vector<8x512xf32>
    %32 = tpu.matmul %24, %31, %cst_9 {dimension_numbers = #tpu.dot_dimension_numbers<[1], [0], [0], [1], [0, 0, 1, 1], [], []>} : vector<8x128xf32>, vector<128x512xf32>, vector<8x512xf32> -> vector<8x512xf32>
    %33 = arith.addf %30, %32 : vector<8x512xf32>
    %34 = vector.extract_strided_slice %33 {offsets = [0, 0], sizes = [8, 384], strides = [1, 1]} : vector<8x512xf32> to vector<8x384xf32>
    %35 = arith.negf %34 : vector<8x384xf32>
    %36 = math.exp %35 : vector<8x384xf32>
    %cst_10 = arith.constant 1.000000e+00 : f32
    %37 = vector.broadcast %cst_10 : f32 to vector<8x384xf32>
    %38 = arith.addf %37, %36 : vector<8x384xf32>
    %39 = arith.divf %37, %38 : vector<8x384xf32>
    %40 = vector.extract_strided_slice %33 {offsets = [0, 384], sizes = [8, 128], strides = [1, 1]} : vector<8x512xf32> to vector<8x128xf32>
    %41 = math.tanh %40 : vector<8x128xf32>
    %42 = vector.extract_strided_slice %39 {offsets = [0, 0], sizes = [8, 128], strides = [1, 1]} : vector<8x384xf32> to vector<8x128xf32>
    %43 = vector.extract_strided_slice %39 {offsets = [0, 128], sizes = [8, 128], strides = [1, 1]} : vector<8x384xf32> to vector<8x128xf32>
    %44 = vector.extract_strided_slice %39 {offsets = [0, 256], sizes = [8, 128], strides = [1, 1]} : vector<8x384xf32> to vector<8x128xf32>
    %45 = arith.mulf %43, %22 : vector<8x128xf32>
    %46 = arith.mulf %42, %41 : vector<8x128xf32>
    %47 = arith.addf %45, %46 : vector<8x128xf32>
    %48 = math.tanh %47 : vector<8x128xf32>
    %49 = arith.mulf %44, %48 : vector<8x128xf32>
    %c0_11 = arith.constant 0 : index
    %c2 = arith.constant 2 : index
    %50 = vector.load %arg1[%c0_11, %c2] : memref<8x128xf32, #tpu.memory_space<vmem>>, vector<8x1xf32>
    %51 = vector.broadcast %50 : vector<8x1xf32> to vector<8x512xf32>
    %52 = vector.broadcast %0 : vector<1x512xf32> to vector<8x512xf32>
    %53 = arith.mulf %51, %52 : vector<8x512xf32>
    %54 = vector.broadcast %1 : vector<1x512xf32> to vector<8x512xf32>
    %55 = arith.addf %53, %54 : vector<8x512xf32>
    %c0_12 = arith.constant 0 : index
    %c0_13 = arith.constant 0 : index
    %56 = vector.load %arg3[%c0_12, %c0_13] : memref<128x512xf32, #tpu.memory_space<vmem>>, vector<128x512xf32>
    %cst_14 = arith.constant dense<0.000000e+00> : vector<8x512xf32>
    %57 = tpu.matmul %49, %56, %cst_14 {dimension_numbers = #tpu.dot_dimension_numbers<[1], [0], [0], [1], [0, 0, 1, 1], [], []>} : vector<8x128xf32>, vector<128x512xf32>, vector<8x512xf32> -> vector<8x512xf32>
    %58 = arith.addf %55, %57 : vector<8x512xf32>
    %59 = vector.extract_strided_slice %58 {offsets = [0, 0], sizes = [8, 384], strides = [1, 1]} : vector<8x512xf32> to vector<8x384xf32>
    %60 = arith.negf %59 : vector<8x384xf32>
    %61 = math.exp %60 : vector<8x384xf32>
    %cst_15 = arith.constant 1.000000e+00 : f32
    %62 = vector.broadcast %cst_15 : f32 to vector<8x384xf32>
    %63 = arith.addf %62, %61 : vector<8x384xf32>
    %64 = arith.divf %62, %63 : vector<8x384xf32>
    %65 = vector.extract_strided_slice %58 {offsets = [0, 384], sizes = [8, 128], strides = [1, 1]} : vector<8x512xf32> to vector<8x128xf32>
    %66 = math.tanh %65 : vector<8x128xf32>
    %67 = vector.extract_strided_slice %64 {offsets = [0, 0], sizes = [8, 128], strides = [1, 1]} : vector<8x384xf32> to vector<8x128xf32>
    %68 = vector.extract_strided_slice %64 {offsets = [0, 128], sizes = [8, 128], strides = [1, 1]} : vector<8x384xf32> to vector<8x128xf32>
    %69 = vector.extract_strided_slice %64 {offsets = [0, 256], sizes = [8, 128], strides = [1, 1]} : vector<8x384xf32> to vector<8x128xf32>
    %70 = arith.mulf %68, %47 : vector<8x128xf32>
    %71 = arith.mulf %67, %66 : vector<8x128xf32>
    %72 = arith.addf %70, %71 : vector<8x128xf32>
    %73 = math.tanh %72 : vector<8x128xf32>
    %74 = arith.mulf %69, %73 : vector<8x128xf32>
    %c0_16 = arith.constant 0 : index
    %c3 = arith.constant 3 : index
    %75 = vector.load %arg1[%c0_16, %c3] : memref<8x128xf32, #tpu.memory_space<vmem>>, vector<8x1xf32>
    %76 = vector.broadcast %75 : vector<8x1xf32> to vector<8x512xf32>
    %77 = vector.broadcast %0 : vector<1x512xf32> to vector<8x512xf32>
    %78 = arith.mulf %76, %77 : vector<8x512xf32>
    %79 = vector.broadcast %1 : vector<1x512xf32> to vector<8x512xf32>
    %80 = arith.addf %78, %79 : vector<8x512xf32>
    %c0_17 = arith.constant 0 : index
    %c0_18 = arith.constant 0 : index
    %81 = vector.load %arg3[%c0_17, %c0_18] : memref<128x512xf32, #tpu.memory_space<vmem>>, vector<128x512xf32>
    %cst_19 = arith.constant dense<0.000000e+00> : vector<8x512xf32>
    %82 = tpu.matmul %74, %81, %cst_19 {dimension_numbers = #tpu.dot_dimension_numbers<[1], [0], [0], [1], [0, 0, 1, 1], [], []>} : vector<8x128xf32>, vector<128x512xf32>, vector<8x512xf32> -> vector<8x512xf32>
    %83 = arith.addf %80, %82 : vector<8x512xf32>
    %84 = vector.extract_strided_slice %83 {offsets = [0, 0], sizes = [8, 384], strides = [1, 1]} : vector<8x512xf32> to vector<8x384xf32>
    %85 = arith.negf %84 : vector<8x384xf32>
    %86 = math.exp %85 : vector<8x384xf32>
    %cst_20 = arith.constant 1.000000e+00 : f32
    %87 = vector.broadcast %cst_20 : f32 to vector<8x384xf32>
    %88 = arith.addf %87, %86 : vector<8x384xf32>
    %89 = arith.divf %87, %88 : vector<8x384xf32>
    %90 = vector.extract_strided_slice %83 {offsets = [0, 384], sizes = [8, 128], strides = [1, 1]} : vector<8x512xf32> to vector<8x128xf32>
    %91 = math.tanh %90 : vector<8x128xf32>
    %92 = vector.extract_strided_slice %89 {offsets = [0, 0], sizes = [8, 128], strides = [1, 1]} : vector<8x384xf32> to vector<8x128xf32>
    %93 = vector.extract_strided_slice %89 {offsets = [0, 128], sizes = [8, 128], strides = [1, 1]} : vector<8x384xf32> to vector<8x128xf32>
    %94 = vector.extract_strided_slice %89 {offsets = [0, 256], sizes = [8, 128], strides = [1, 1]} : vector<8x384xf32> to vector<8x128xf32>
    %95 = arith.mulf %93, %72 : vector<8x128xf32>
    %96 = arith.mulf %92, %91 : vector<8x128xf32>
    %97 = arith.addf %95, %96 : vector<8x128xf32>
    %98 = math.tanh %97 : vector<8x128xf32>
    %99 = arith.mulf %94, %98 : vector<8x128xf32>
    %c0_21 = arith.constant 0 : index
    %c4 = arith.constant 4 : index
    %100 = vector.load %arg1[%c0_21, %c4] : memref<8x128xf32, #tpu.memory_space<vmem>>, vector<8x1xf32>
    %101 = vector.broadcast %100 : vector<8x1xf32> to vector<8x512xf32>
    %102 = vector.broadcast %0 : vector<1x512xf32> to vector<8x512xf32>
    %103 = arith.mulf %101, %102 : vector<8x512xf32>
    %104 = vector.broadcast %1 : vector<1x512xf32> to vector<8x512xf32>
    %105 = arith.addf %103, %104 : vector<8x512xf32>
    %c0_22 = arith.constant 0 : index
    %c0_23 = arith.constant 0 : index
    %106 = vector.load %arg3[%c0_22, %c0_23] : memref<128x512xf32, #tpu.memory_space<vmem>>, vector<128x512xf32>
    %cst_24 = arith.constant dense<0.000000e+00> : vector<8x512xf32>
    %107 = tpu.matmul %99, %106, %cst_24 {dimension_numbers = #tpu.dot_dimension_numbers<[1], [0], [0], [1], [0, 0, 1, 1], [], []>} : vector<8x128xf32>, vector<128x512xf32>, vector<8x512xf32> -> vector<8x512xf32>
    %108 = arith.addf %105, %107 : vector<8x512xf32>
    %109 = vector.extract_strided_slice %108 {offsets = [0, 0], sizes = [8, 384], strides = [1, 1]} : vector<8x512xf32> to vector<8x384xf32>
    %110 = arith.negf %109 : vector<8x384xf32>
    %111 = math.exp %110 : vector<8x384xf32>
    %cst_25 = arith.constant 1.000000e+00 : f32
    %112 = vector.broadcast %cst_25 : f32 to vector<8x384xf32>
    %113 = arith.addf %112, %111 : vector<8x384xf32>
    %114 = arith.divf %112, %113 : vector<8x384xf32>
    %115 = vector.extract_strided_slice %108 {offsets = [0, 384], sizes = [8, 128], strides = [1, 1]} : vector<8x512xf32> to vector<8x128xf32>
    %116 = math.tanh %115 : vector<8x128xf32>
    %117 = vector.extract_strided_slice %114 {offsets = [0, 0], sizes = [8, 128], strides = [1, 1]} : vector<8x384xf32> to vector<8x128xf32>
    %118 = vector.extract_strided_slice %114 {offsets = [0, 128], sizes = [8, 128], strides = [1, 1]} : vector<8x384xf32> to vector<8x128xf32>
    %119 = vector.extract_strided_slice %114 {offsets = [0, 256], sizes = [8, 128], strides = [1, 1]} : vector<8x384xf32> to vector<8x128xf32>
    %120 = arith.mulf %118, %97 : vector<8x128xf32>
    %121 = arith.mulf %117, %116 : vector<8x128xf32>
    %122 = arith.addf %120, %121 : vector<8x128xf32>
    %123 = math.tanh %122 : vector<8x128xf32>
    %124 = arith.mulf %119, %123 : vector<8x128xf32>
    %c0_26 = arith.constant 0 : index
    %c5 = arith.constant 5 : index
    %125 = vector.load %arg1[%c0_26, %c5] : memref<8x128xf32, #tpu.memory_space<vmem>>, vector<8x1xf32>
    %126 = vector.broadcast %125 : vector<8x1xf32> to vector<8x512xf32>
    %127 = vector.broadcast %0 : vector<1x512xf32> to vector<8x512xf32>
    %128 = arith.mulf %126, %127 : vector<8x512xf32>
    %129 = vector.broadcast %1 : vector<1x512xf32> to vector<8x512xf32>
    %130 = arith.addf %128, %129 : vector<8x512xf32>
    %c0_27 = arith.constant 0 : index
    %c0_28 = arith.constant 0 : index
    %131 = vector.load %arg3[%c0_27, %c0_28] : memref<128x512xf32, #tpu.memory_space<vmem>>, vector<128x512xf32>
    %cst_29 = arith.constant dense<0.000000e+00> : vector<8x512xf32>
    %132 = tpu.matmul %124, %131, %cst_29 {dimension_numbers = #tpu.dot_dimension_numbers<[1], [0], [0], [1], [0, 0, 1, 1], [], []>} : vector<8x128xf32>, vector<128x512xf32>, vector<8x512xf32> -> vector<8x512xf32>
    %133 = arith.addf %130, %132 : vector<8x512xf32>
    %134 = vector.extract_strided_slice %133 {offsets = [0, 0], sizes = [8, 384], strides = [1, 1]} : vector<8x512xf32> to vector<8x384xf32>
    %135 = arith.negf %134 : vector<8x384xf32>
    %136 = math.exp %135 : vector<8x384xf32>
    %cst_30 = arith.constant 1.000000e+00 : f32
    %137 = vector.broadcast %cst_30 : f32 to vector<8x384xf32>
    %138 = arith.addf %137, %136 : vector<8x384xf32>
    %139 = arith.divf %137, %138 : vector<8x384xf32>
    %140 = vector.extract_strided_slice %133 {offsets = [0, 384], sizes = [8, 128], strides = [1, 1]} : vector<8x512xf32> to vector<8x128xf32>
    %141 = math.tanh %140 : vector<8x128xf32>
    %142 = vector.extract_strided_slice %139 {offsets = [0, 0], sizes = [8, 128], strides = [1, 1]} : vector<8x384xf32> to vector<8x128xf32>
    %143 = vector.extract_strided_slice %139 {offsets = [0, 128], sizes = [8, 128], strides = [1, 1]} : vector<8x384xf32> to vector<8x128xf32>
    %144 = vector.extract_strided_slice %139 {offsets = [0, 256], sizes = [8, 128], strides = [1, 1]} : vector<8x384xf32> to vector<8x128xf32>
    %145 = arith.mulf %143, %122 : vector<8x128xf32>
    %146 = arith.mulf %142, %141 : vector<8x128xf32>
    %147 = arith.addf %145, %146 : vector<8x128xf32>
    %148 = math.tanh %147 : vector<8x128xf32>
    %149 = arith.mulf %144, %148 : vector<8x128xf32>
    %c0_31 = arith.constant 0 : index
    %c6 = arith.constant 6 : index
    %150 = vector.load %arg1[%c0_31, %c6] : memref<8x128xf32, #tpu.memory_space<vmem>>, vector<8x1xf32>
    %151 = vector.broadcast %150 : vector<8x1xf32> to vector<8x512xf32>
    %152 = vector.broadcast %0 : vector<1x512xf32> to vector<8x512xf32>
    %153 = arith.mulf %151, %152 : vector<8x512xf32>
    %154 = vector.broadcast %1 : vector<1x512xf32> to vector<8x512xf32>
    %155 = arith.addf %153, %154 : vector<8x512xf32>
    %c0_32 = arith.constant 0 : index
    %c0_33 = arith.constant 0 : index
    %156 = vector.load %arg3[%c0_32, %c0_33] : memref<128x512xf32, #tpu.memory_space<vmem>>, vector<128x512xf32>
    %cst_34 = arith.constant dense<0.000000e+00> : vector<8x512xf32>
    %157 = tpu.matmul %149, %156, %cst_34 {dimension_numbers = #tpu.dot_dimension_numbers<[1], [0], [0], [1], [0, 0, 1, 1], [], []>} : vector<8x128xf32>, vector<128x512xf32>, vector<8x512xf32> -> vector<8x512xf32>
    %158 = arith.addf %155, %157 : vector<8x512xf32>
    %159 = vector.extract_strided_slice %158 {offsets = [0, 0], sizes = [8, 384], strides = [1, 1]} : vector<8x512xf32> to vector<8x384xf32>
    %160 = arith.negf %159 : vector<8x384xf32>
    %161 = math.exp %160 : vector<8x384xf32>
    %cst_35 = arith.constant 1.000000e+00 : f32
    %162 = vector.broadcast %cst_35 : f32 to vector<8x384xf32>
    %163 = arith.addf %162, %161 : vector<8x384xf32>
    %164 = arith.divf %162, %163 : vector<8x384xf32>
    %165 = vector.extract_strided_slice %158 {offsets = [0, 384], sizes = [8, 128], strides = [1, 1]} : vector<8x512xf32> to vector<8x128xf32>
    %166 = math.tanh %165 : vector<8x128xf32>
    %167 = vector.extract_strided_slice %164 {offsets = [0, 0], sizes = [8, 128], strides = [1, 1]} : vector<8x384xf32> to vector<8x128xf32>
    %168 = vector.extract_strided_slice %164 {offsets = [0, 128], sizes = [8, 128], strides = [1, 1]} : vector<8x384xf32> to vector<8x128xf32>
    %169 = vector.extract_strided_slice %164 {offsets = [0, 256], sizes = [8, 128], strides = [1, 1]} : vector<8x384xf32> to vector<8x128xf32>
    %170 = arith.mulf %168, %147 : vector<8x128xf32>
    %171 = arith.mulf %167, %166 : vector<8x128xf32>
    %172 = arith.addf %170, %171 : vector<8x128xf32>
    %173 = math.tanh %172 : vector<8x128xf32>
    %174 = arith.mulf %169, %173 : vector<8x128xf32>
    %c0_36 = arith.constant 0 : index
    %c7 = arith.constant 7 : index
    %175 = vector.load %arg1[%c0_36, %c7] : memref<8x128xf32, #tpu.memory_space<vmem>>, vector<8x1xf32>
    %176 = vector.broadcast %175 : vector<8x1xf32> to vector<8x512xf32>
    %177 = vector.broadcast %0 : vector<1x512xf32> to vector<8x512xf32>
    %178 = arith.mulf %176, %177 : vector<8x512xf32>
    %179 = vector.broadcast %1 : vector<1x512xf32> to vector<8x512xf32>
    %180 = arith.addf %178, %179 : vector<8x512xf32>
    %c0_37 = arith.constant 0 : index
    %c0_38 = arith.constant 0 : index
    %181 = vector.load %arg3[%c0_37, %c0_38] : memref<128x512xf32, #tpu.memory_space<vmem>>, vector<128x512xf32>
    %cst_39 = arith.constant dense<0.000000e+00> : vector<8x512xf32>
    %182 = tpu.matmul %174, %181, %cst_39 {dimension_numbers = #tpu.dot_dimension_numbers<[1], [0], [0], [1], [0, 0, 1, 1], [], []>} : vector<8x128xf32>, vector<128x512xf32>, vector<8x512xf32> -> vector<8x512xf32>
    %183 = arith.addf %180, %182 : vector<8x512xf32>
    %184 = vector.extract_strided_slice %183 {offsets = [0, 0], sizes = [8, 384], strides = [1, 1]} : vector<8x512xf32> to vector<8x384xf32>
    %185 = arith.negf %184 : vector<8x384xf32>
    %186 = math.exp %185 : vector<8x384xf32>
    %cst_40 = arith.constant 1.000000e+00 : f32
    %187 = vector.broadcast %cst_40 : f32 to vector<8x384xf32>
    %188 = arith.addf %187, %186 : vector<8x384xf32>
    %189 = arith.divf %187, %188 : vector<8x384xf32>
    %190 = vector.extract_strided_slice %183 {offsets = [0, 384], sizes = [8, 128], strides = [1, 1]} : vector<8x512xf32> to vector<8x128xf32>
    %191 = math.tanh %190 : vector<8x128xf32>
    %192 = vector.extract_strided_slice %189 {offsets = [0, 0], sizes = [8, 128], strides = [1, 1]} : vector<8x384xf32> to vector<8x128xf32>
    %193 = vector.extract_strided_slice %189 {offsets = [0, 128], sizes = [8, 128], strides = [1, 1]} : vector<8x384xf32> to vector<8x128xf32>
    %194 = vector.extract_strided_slice %189 {offsets = [0, 256], sizes = [8, 128], strides = [1, 1]} : vector<8x384xf32> to vector<8x128xf32>
    %195 = arith.mulf %193, %172 : vector<8x128xf32>
    %196 = arith.mulf %192, %191 : vector<8x128xf32>
    %197 = arith.addf %195, %196 : vector<8x128xf32>
    %198 = math.tanh %197 : vector<8x128xf32>
    %199 = arith.mulf %194, %198 : vector<8x128xf32>
    %cst_41 = arith.constant 0.000000e+00 : f32
    %200 = vector.broadcast %cst_41 : f32 to vector<8x128xf32>
    %201 = arith.maximumf %199, %200 : vector<8x128xf32>
    %c0_42 = arith.constant 0 : index
    %c0_43 = arith.constant 0 : index
    %202 = vector.load %arg5[%c0_42, %c0_43] : memref<128x512xf32, #tpu.memory_space<vmem>>, vector<128x512xf32>
    %cst_44 = arith.constant dense<0.000000e+00> : vector<8x512xf32>
    %203 = tpu.matmul %201, %202, %cst_44 {dimension_numbers = #tpu.dot_dimension_numbers<[1], [0], [0], [1], [0, 0, 1, 1], [], []>} : vector<8x128xf32>, vector<128x512xf32>, vector<8x512xf32> -> vector<8x512xf32>
    %c0_45 = arith.constant 0 : index
    %c0_46 = arith.constant 0 : index
    %204 = vector.load %arg7[%c0_45, %c0_46] : memref<1x512xf32, #tpu.memory_space<vmem>>, vector<1x512xf32>
    %205 = vector.broadcast %204 : vector<1x512xf32> to vector<8x512xf32>
    %206 = arith.addf %203, %205 : vector<8x512xf32>
    %c0_47 = arith.constant 0 : index
    %c0_48 = arith.constant 0 : index
    %207 = vector.load %arg8[%c0_47, %c0_48] : memref<1x128xf32, #tpu.memory_space<vmem>>, vector<1x128xf32>
    %c0_49 = arith.constant 0 : index
    %c0_50 = arith.constant 0 : index
    %208 = vector.load %arg9[%c0_49, %c0_50] : memref<1x1xf32, #tpu.memory_space<vmem>>, vector<1x1xf32>
    %209 = vector.extract_strided_slice %206 {offsets = [0, 0], sizes = [8, 128], strides = [1, 1]} : vector<8x512xf32> to vector<8x128xf32>
    %210 = arith.negf %209 : vector<8x128xf32>
    %211 = math.exp %210 : vector<8x128xf32>
    %cst_51 = arith.constant 1.000000e+00 : f32
    %212 = vector.broadcast %cst_51 : f32 to vector<8x128xf32>
    %213 = arith.addf %212, %211 : vector<8x128xf32>
    %214 = arith.divf %212, %213 : vector<8x128xf32>
    %215 = vector.extract_strided_slice %206 {offsets = [0, 256], sizes = [8, 128], strides = [1, 1]} : vector<8x512xf32> to vector<8x128xf32>
    %216 = arith.negf %215 : vector<8x128xf32>
    %217 = math.exp %216 : vector<8x128xf32>
    %cst_52 = arith.constant 1.000000e+00 : f32
    %218 = vector.broadcast %cst_52 : f32 to vector<8x128xf32>
    %219 = arith.addf %218, %217 : vector<8x128xf32>
    %220 = arith.divf %218, %219 : vector<8x128xf32>
    %221 = vector.extract_strided_slice %206 {offsets = [0, 384], sizes = [8, 128], strides = [1, 1]} : vector<8x512xf32> to vector<8x128xf32>
    %222 = math.tanh %221 : vector<8x128xf32>
    %223 = arith.mulf %214, %222 : vector<8x128xf32>
    %224 = math.tanh %223 : vector<8x128xf32>
    %225 = arith.mulf %220, %224 : vector<8x128xf32>
    %cst_53 = arith.constant 0.000000e+00 : f32
    %226 = vector.broadcast %cst_53 : f32 to vector<8x128xf32>
    %227 = arith.maximumf %225, %226 : vector<8x128xf32>
    %228 = vector.broadcast %207 : vector<1x128xf32> to vector<8x128xf32>
    %229 = arith.mulf %227, %228 : vector<8x128xf32>
    %cst_54 = arith.constant dense<0.000000e+00> : vector<8xf32>
    %230 = vector.multi_reduction <add>, %229, %cst_54 [1] : vector<8x128xf32> to vector<8xf32>
    %231 = vector.shape_cast %230 : vector<8xf32> to vector<8x1xf32>
    %232 = vector.broadcast %208 : vector<1x1xf32> to vector<8x1xf32>
    %233 = arith.addf %231, %232 : vector<8x1xf32>
    %c0_55 = arith.constant 0 : index
    %c0_56 = arith.constant 0 : index
    %234 = vector.load %arg6[%c0_55, %c0_56] : memref<128x512xf32, #tpu.memory_space<vmem>>, vector<128x512xf32>
    %cst_57 = arith.constant dense<0.000000e+00> : vector<8x512xf32>
    %235 = tpu.matmul %225, %234, %cst_57 {dimension_numbers = #tpu.dot_dimension_numbers<[1], [0], [0], [1], [0, 0, 1, 1], [], []>} : vector<8x128xf32>, vector<128x512xf32>, vector<8x512xf32> -> vector<8x512xf32>
    %236 = arith.addf %206, %235 : vector<8x512xf32>
    %237 = vector.extract_strided_slice %236 {offsets = [0, 0], sizes = [8, 384], strides = [1, 1]} : vector<8x512xf32> to vector<8x384xf32>
    %238 = arith.negf %237 : vector<8x384xf32>
    %239 = math.exp %238 : vector<8x384xf32>
    %cst_58 = arith.constant 1.000000e+00 : f32
    %240 = vector.broadcast %cst_58 : f32 to vector<8x384xf32>
    %241 = arith.addf %240, %239 : vector<8x384xf32>
    %242 = arith.divf %240, %241 : vector<8x384xf32>
    %243 = vector.extract_strided_slice %236 {offsets = [0, 384], sizes = [8, 128], strides = [1, 1]} : vector<8x512xf32> to vector<8x128xf32>
    %244 = math.tanh %243 : vector<8x128xf32>
    %245 = vector.extract_strided_slice %242 {offsets = [0, 0], sizes = [8, 128], strides = [1, 1]} : vector<8x384xf32> to vector<8x128xf32>
    %246 = vector.extract_strided_slice %242 {offsets = [0, 128], sizes = [8, 128], strides = [1, 1]} : vector<8x384xf32> to vector<8x128xf32>
    %247 = vector.extract_strided_slice %242 {offsets = [0, 256], sizes = [8, 128], strides = [1, 1]} : vector<8x384xf32> to vector<8x128xf32>
    %248 = arith.mulf %246, %223 : vector<8x128xf32>
    %249 = arith.mulf %245, %244 : vector<8x128xf32>
    %250 = arith.addf %248, %249 : vector<8x128xf32>
    %251 = math.tanh %250 : vector<8x128xf32>
    %252 = arith.mulf %247, %251 : vector<8x128xf32>
    %cst_59 = arith.constant 0.000000e+00 : f32
    %253 = vector.broadcast %cst_59 : f32 to vector<8x128xf32>
    %254 = arith.maximumf %252, %253 : vector<8x128xf32>
    %255 = vector.broadcast %207 : vector<1x128xf32> to vector<8x128xf32>
    %256 = arith.mulf %254, %255 : vector<8x128xf32>
    %cst_60 = arith.constant dense<0.000000e+00> : vector<8xf32>
    %257 = vector.multi_reduction <add>, %256, %cst_60 [1] : vector<8x128xf32> to vector<8xf32>
    %258 = vector.shape_cast %257 : vector<8xf32> to vector<8x1xf32>
    %259 = vector.broadcast %208 : vector<1x1xf32> to vector<8x1xf32>
    %260 = arith.addf %258, %259 : vector<8x1xf32>
    %261 = tpu.concatenate %233, %260 in 1 : vector<8x1xf32>, vector<8x1xf32> -> vector<8x2xf32>
    %c0_61 = arith.constant 0 : index
    %c0_62 = arith.constant 0 : index
    %262 = vector.load %arg10[%c0_61, %c0_62] : memref<8x2xf32, #tpu.memory_space<vmem>>, vector<8x2xf32>
    tpu.vector_store %arg10[%c0_61, %c0_62], %261 {strides = array<i32>} : memref<8x2xf32, #tpu.memory_space<vmem>>, vector<8x2xf32>,
    return
  }
  func.func @transform_0(%arg0: i32) -> (i32, i32) {
    %c0_i32 = arith.constant 0 : i32
    %c0_i32_0 = arith.constant 0 : i32
    return %arg0, %c0_i32 : i32, i32
  }
  func.func @transform_1(%arg0: i32) -> (i32, i32) {
    %c0_i32 = arith.constant 0 : i32
    %c0_i32_0 = arith.constant 0 : i32
    %c0_i32_1 = arith.constant 0 : i32
    return %c0_i32, %c0_i32_0 : i32, i32
  }
  func.func @transform_2(%arg0: i32) -> (i32, i32) {
    %c0_i32 = arith.constant 0 : i32
    %c0_i32_0 = arith.constant 0 : i32
    %c0_i32_1 = arith.constant 0 : i32
    return %c0_i32, %c0_i32_0 : i32, i32
  }
  func.func @transform_3(%arg0: i32) -> (i32, i32) {
    %c0_i32 = arith.constant 0 : i32
    %c0_i32_0 = arith.constant 0 : i32
    %c0_i32_1 = arith.constant 0 : i32
    return %c0_i32, %c0_i32_0 : i32, i32
  }
  func.func @transform_4(%arg0: i32) -> (i32, i32) {
    %c0_i32 = arith.constant 0 : i32
    %c0_i32_0 = arith.constant 0 : i32
    %c0_i32_1 = arith.constant 0 : i32
    return %c0_i32, %c0_i32_0 : i32, i32
  }
  func.func @transform_5(%arg0: i32) -> (i32, i32) {
    %c0_i32 = arith.constant 0 : i32
    %c0_i32_0 = arith.constant 0 : i32
    %c0_i32_1 = arith.constant 0 : i32
    return %c0_i32, %c0_i32_0 : i32, i32
  }
  func.func @transform_6(%arg0: i32) -> (i32, i32) {
    %c0_i32 = arith.constant 0 : i32
    %c0_i32_0 = arith.constant 0 : i32
    %c0_i32_1 = arith.constant 0 : i32
    return %c0_i32, %c0_i32_0 : i32, i32
  }
  func.func @transform_7(%arg0: i32) -> (i32, i32) {
    %c0_i32 = arith.constant 0 : i32
    %c0_i32_0 = arith.constant 0 : i32
    %c0_i32_1 = arith.constant 0 : i32
    return %c0_i32, %c0_i32_0 : i32, i32
  }
  func.func @transform_8(%arg0: i32) -> (i32, i32) {
    %c0_i32 = arith.constant 0 : i32
    %c0_i32_0 = arith.constant 0 : i32
    %c0_i32_1 = arith.constant 0 : i32
    return %c0_i32, %c0_i32_0 : i32, i32
  }
  func.func @transform_9(%arg0: i32) -> (i32, i32) {
    %c0_i32 = arith.constant 0 : i32
    %c0_i32_0 = arith.constant 0 : i32
    return %arg0, %c0_i32 : i32, i32
  }
}

</mosaic_0001>

<bundles_post_ra>
// kernel: tpu_custom_call.1
= control target key start
LH: loop header
LB: loop body
LE: loop exit
PB: predicated region body
PF: predicated region fallthrough
CT: control target
= control target key end

     0   :  { %s3496_s0 = inlined_call_operand.hbm [shape: f32[8,128], index: 0, kind: input, shape index: {}]   ;;  %s3497_s1 = inlined_call_operand.vmem [shape: f32[1,512], index: 1, kind: input, shape index: {}]   ;;  %s3498_s2 = inlined_call_operand.hbm [shape: f32[128,512], index: 2, kind: input, shape index: {}]   ;;  %s3499_s3 = inlined_call_operand.vmem [shape: f32[1,512], index: 3, kind: input, shape index: {}]   ;;  %s3500_s4 = inlined_call_operand.hbm [shape: f32[128,512], index: 4, kind: input, shape index: {}]   ;;  %s3501_s5 = inlined_call_operand.hbm [shape: f32[128,512], index: 5, kind: input, shape index: {}]   ;;  %s3502_s6 = inlined_call_operand.vmem [shape: f32[1,512], index: 6, kind: input, shape index: {}]   ;;  %s3503_s7 = inlined_call_operand.vmem [shape: f32[1,128], index: 7, kind: input, shape index: {}]   ;;  %s3504_s8 = inlined_call_operand.<no memory space> [shape: f32[1,1], index: 8, kind: input, shape index: {}]   ;;  %s3505_s9 = inlined_call_operand.vmem [shape: f32[8,2], index: 9, kind: output, shape index: {}]  }
   0x1   :  { %v14_v0 = vstv %s3504_s8 }
   0x2   :  { %15 = vst [vmem:[#allocation2] sm:$0x1] %v14_v0 }
   0x3   :  { %16 = vsyncpa [#allocation4], 0 }
   0x4   :  { %17 = vsyncpa [#allocation6], 0 }
   0x5   :  { %18 = vsyncpa [#allocation9], 0  ;;  %s2893_s11 = smov [#allocation5]   ;;  %s2799_s15 = scalar_lea.hbm %s3498_s2, 8192 }
   0x6   :  { %s36_s12 = sshll.u32 %s2893_s11, 4  ;;  %p2800_p0 = scmp.ne.s32.totalorder %s3498_s2, %s2799_s15  ;;  %s37_s12 = int_to_ptr.vmem [resolvable:$true] %s36_s12 }
   0x7   :  { %p2803_p1 = scmp.lt.u32.totalorder %s2799_s15, %s3498_s2 }
   0x9   :  { %p2805_p2 = pnand %p2803_p1, %p2800_p0 }
   0xb   :  { %2808 = shalt.err (!%p2805_p2)
}
   0xc   :  { %s2809_s8 = scalar_lea.vmem %s37_s12, 8192  ;;  %p2814_p4 = scmp.lt.s32.totalorder %s37_s12, %s37_s12 }
   0xd   :  { %p2810_p3 = scmp.ne.s32.totalorder %s37_s12, %s2809_s8  ;;  %p2815_p5 = scmp.lt.s32.totalorder %s2809_s8, %s2809_s8 }
   0xf   :  { %p2816_p6 = por %p2815_p5, %p2814_p4 }
  0x11   :  { %p2817_p7 = pnand %p2816_p6, %p2810_p3 }
  0x13   :  { %2820 = shalt.err (!%p2817_p7)
}
  0x14   :  { %s2894_s20 = smov 512   ;;  %s2895_s21 = smov 32  }
  0x15   :  { %42 = dma.hbm_to_vmem [thread:$0]  %s3498_s2, 8192, %s37_s12, [#allocation6], %s2894_s20, %s2894_s20, %s2895_s21  }
  0x16   :  { %s2896_s24 = smov [#allocation3]   ;;  %s2897_s26 = smov [#allocation7]  }
  0x17   :  { %s25_s25 = sshll.u32 %s2896_s24, 4  ;;  %s50_s27 = sshll.u32 %s2897_s26, 4  ;;  %s26_s25 = int_to_ptr.vmem [resolvable:$true] %s25_s25  ;;  %s51_s27 = int_to_ptr.vmem [resolvable:$true] %s50_s27 }
  0x18   :  { %s2821_s30 = scalar_lea.hbm %s3496_s0, 128 }
  0x19   :  { %p2822_p8 = scmp.ne.s32.totalorder %s3496_s0, %s2821_s30  ;;  %p2825_p9 = scmp.lt.u32.totalorder %s2821_s30, %s3496_s0 }
  0x1b   :  { %p2827_p10 = pnand %p2825_p9, %p2822_p8 }
  0x1d   :  { %2830 = shalt.err (!%p2827_p10)
}
  0x1e   :  { %s2831_s2 = scalar_lea.vmem %s26_s25, 128  ;;  %p2836_p12 = scmp.lt.s32.totalorder %s26_s25, %s26_s25 }
  0x1f   :  { %p2832_p11 = scmp.ne.s32.totalorder %s26_s25, %s2831_s2  ;;  %p2837_p13 = scmp.lt.s32.totalorder %s2831_s2, %s2831_s2 }
  0x21   :  { %p2838_p0 = por %p2837_p13, %p2836_p12 }
  0x23   :  { %p2839_p1 = pnand %p2838_p0, %p2832_p11 }
  0x25   :  { %2842 = shalt.err (!%p2839_p1)
}
  0x26   :  { %28 = dma.hbm_to_vmem [thread:$0]  %s3496_s0, 128, %s26_s25, [#allocation4]  }
  0x27   :  { %s2843_s18 = scalar_lea.hbm %s3500_s4, 8192 }
  0x28   :  { %p2844_p2 = scmp.ne.s32.totalorder %s3500_s4, %s2843_s18  ;;  %p2847_p3 = scmp.lt.u32.totalorder %s2843_s18, %s3500_s4 }
  0x2a   :  { %p2849_p4 = pnand %p2847_p3, %p2844_p2 }
  0x2c   :  { %2852 = shalt.err (!%p2849_p4)
}
  0x2d   :  { %s2853_s24 = scalar_lea.vmem %s51_s27, 8192  ;;  %p2858_p6 = scmp.lt.s32.totalorder %s51_s27, %s51_s27 }
  0x2e   :  { %p2854_p5 = scmp.ne.s32.totalorder %s51_s27, %s2853_s24  ;;  %p2859_p7 = scmp.lt.s32.totalorder %s2853_s24, %s2853_s24 }
  0x30   :  { %p2860_p8 = por %p2859_p7, %p2858_p6 }
  0x32   :  { %p2861_p9 = pnand %p2860_p8, %p2854_p5 }
  0x34   :  { %2864 = shalt.err (!%p2861_p9)
}
  0x35   :  { %56 = dma.hbm_to_vmem [thread:$0]  %s3500_s4, 8192, %s51_s27, [#allocation6], %s2894_s20, %s2894_s20, %s2895_s21  }
  0x36   :  { %s2898_s26 = smov [#allocation8]   ;;  %s2865_s10 = scalar_lea.hbm %s3501_s5, 8192 }
  0x37   :  { %s62_s28 = sshll.u32 %s2898_s26, 4  ;;  %p2866_p10 = scmp.ne.s32.totalorder %s3501_s5, %s2865_s10  ;;  %s63_s28 = int_to_ptr.vmem [resolvable:$true] %s62_s28 }
  0x38   :  { %p2869_p11 = scmp.lt.u32.totalorder %s2865_s10, %s3501_s5 }
  0x3a   :  { %p2871_p12 = pnand %p2869_p11, %p2866_p10 }
  0x3c   :  { %2874 = shalt.err (!%p2871_p12)
}
  0x3d   :  { %s2875_s12 = scalar_lea.vmem %s63_s28, 8192  ;;  %p2880_p0 = scmp.lt.s32.totalorder %s63_s28, %s63_s28 }
  0x3e   :  { %p2876_p13 = scmp.ne.s32.totalorder %s63_s28, %s2875_s12  ;;  %p2881_p1 = scmp.lt.s32.totalorder %s2875_s12, %s2875_s12 }
  0x40   :  { %p2882_p2 = por %p2881_p1, %p2880_p0 }
  0x42   :  { %p2883_p3 = pnand %p2882_p2, %p2876_p13 }
  0x44   :  { %2886 = shalt.err (!%p2883_p3)
}
  0x45   :  { %68 = dma.hbm_to_vmem [thread:$0]  %s3501_s5, 8192, %s63_s28, [#allocation9], %s2894_s20, %s2894_s20, %s2895_s21  }
  0x46   :  { %2887 = dma.done.wait [#allocation4], 128  }
  0x47   :  { %2888 = vsyncadd [#allocation4], 4294967168 }
  0x48   :  { %2889 = dma.done.wait [#allocation6], 16384  }
  0x49   :  { %2890 = vsyncadd [#allocation6], 4294950912 }
  0x4a   :  { %2891 = dma.done.wait [#allocation9], 8192  }
  0x4b   :  { %2892 = vsyncadd [#allocation9], 4294959104  ;;  %v2899_v1 = vmov 0   ;;  %v3019_v2 = vld [vmem:[#allocation3] sm:$0xff]  ;;  %v172_v3 = vld [vmem:[#allocation5 + $0x8] sm:$0xff]  ;;  %v3506_v39 = vmov 0.0  }
  0x4c   :  { %2637 = vset.pattern.permute.xlu0 %v2899_v1  ;;  %v176_v4 = vld [vmem:[#allocation5 + $0x28] sm:$0xff]  ;;  %v174_v5 = vld [vmem:[#allocation5 + $0x18] sm:$0xff]  ;;  %v171_v8 = vld [vmem:[#allocation5] sm:$0xff]  ;;  %299 = vmatprep.mubr.f32.mxu0 %v3506_v39  ;;  %vm2004_vm0 = vcmask 7168   ;;  %vm2006_vm1 = vcmask 15360  }
  0x4d   :  { %92 = vperm.xlu0 %2637, %v3019_v2   ;;  %v3022_v6 = vpack.c.bf16 %v176_v4, %v172_v3  ;;  %v178_v7 = vld [vmem:[#allocation5 + $0x38] sm:$0xff]  ;;  %v175_v9 = vld [vmem:[#allocation5 + $0x20] sm:$0xff]  ;;  %v173_v12 = vld [vmem:[#allocation5 + $0x10] sm:$0xff]  ;;  %370 = vmatprep.mubr.f32.mxu1 %v3506_v39 }
  0x4e   :  { %v3024_v10 = vpack.c.bf16 %v178_v7, %v174_v5  ;;  %v3026_v11 = vpack.c.bf16 %v175_v9, %v171_v8  ;;  %v177_v13 = vld [vmem:[#allocation5 + $0x30] sm:$0xff]  ;;  %v180_v15 = vld [vmem:[#allocation5 + $0x48] sm:$0xff]  ;;  %v182_v17 = vld [vmem:[#allocation5 + $0x58] sm:$0xff] }
  0x4f   :  { %2046 = vmatprep.subr.bf16.mxu0 %v3022_v6  ;;  %v3029_v14 = vpack.c.bf16 %v177_v13, %v173_v12  ;;  %v184_v16 = vld [vmem:[#allocation5 + $0x68] sm:$0xff]  ;;  %v186_v19 = vld [vmem:[#allocation5 + $0x78] sm:$0xff]  ;;  %v179_v20 = vld [vmem:[#allocation5 + $0x40] sm:$0xff] }
  0x50   :  { %2078 = vmatprep.subr.bf16.mxu1 %v3024_v10  ;;  %2048 = vmatpush1.bf16.msra.mxu0 %v3026_v11  ;;  %v3034_v18 = vpack.c.bf16 %v184_v16, %v180_v15  ;;  %v183_v21 = vld [vmem:[#allocation5 + $0x60] sm:$0xff]  ;;  %v3036_v22 = vpack.c.bf16 %v186_v19, %v182_v17  ;;  %v181_v24 = vld [vmem:[#allocation5 + $0x50] sm:$0xff]  ;;  %v188_v27 = vld [vmem:[#allocation5 + $0x88] sm:$0xff] }
  0x51   :  { %2080 = vmatpush1.bf16.msra.mxu1 %v3029_v14  ;;  %v3038_v23 = vpack.c.bf16 %v183_v21, %v179_v20  ;;  %v185_v25 = vld [vmem:[#allocation5 + $0x70] sm:$0xff]  ;;  %v192_v28 = vld [vmem:[#allocation5 + $0xa8] sm:$0xff]  ;;  %v190_v29 = vld [vmem:[#allocation5 + $0x98] sm:$0xff] }
  0x52   :  { %2050 = vmatprep.subr.bf16.mxu0 %v3034_v18  ;;  %v3041_v26 = vpack.c.bf16 %v185_v25, %v181_v24  ;;  %2082 = vmatprep.subr.bf16.mxu1 %v3036_v22  ;;  %v3046_v30 = vpack.c.bf16 %v192_v28, %v188_v27  ;;  %v194_v31 = vld [vmem:[#allocation5 + $0xb8] sm:$0xff]  ;;  %v187_v32 = vld [vmem:[#allocation5 + $0x80] sm:$0xff]  ;;  %v189_v36 = vld [vmem:[#allocation5 + $0x90] sm:$0xff] }
  0x53   :  { %v191_v33 = vld [vmem:[#allocation5 + $0xa0] sm:$0xff]  ;;  %v3048_v34 = vpack.c.bf16 %v194_v31, %v190_v29  ;;  %v193_v37 = vld [vmem:[#allocation5 + $0xb0] sm:$0xff]  ;;  %v196_v38 = vld [vmem:[#allocation5 + $0xc8] sm:$0xff] }
  0x54   :  { %2052 = vmatpush1.bf16.msra.mxu0 %v3038_v23  ;;  %v3050_v35 = vpack.c.bf16 %v191_v33, %v187_v32  ;;  %v3055_v40 = vpack.c.bf16 %v193_v37, %v189_v36  ;;  %v200_v41 = vld [vmem:[#allocation5 + $0xe8] sm:$0xff]  ;;  %v198_v42 = vld [vmem:[#allocation5 + $0xd8] sm:$0xff]  ;;  %v195_v46 = vld [vmem:[#allocation5 + $0xc0] sm:$0xff] }
  0x55   :  { %2084 = vmatpush1.bf16.msra.mxu1 %v3041_v26  ;;  %2054 = vmatprep.subr.bf16.mxu0 %v3046_v30  ;;  %v202_v43 = vld [vmem:[#allocation5 + $0xf8] sm:$0xff]  ;;  %v3059_v44 = vpack.c.bf16 %v200_v41, %v196_v38  ;;  %v199_v47 = vld [vmem:[#allocation5 + $0xe0] sm:$0xff]  ;;  %v197_v48 = vld [vmem:[#allocation5 + $0xd0] sm:$0xff] }
  0x56   :  { %2086 = vmatprep.subr.bf16.mxu1 %v3048_v34  ;;  %v3061_v45 = vpack.c.bf16 %v202_v43, %v198_v42  ;;  %v3064_v49 = vpack.c.bf16 %v199_v47, %v195_v46  ;;  %v201_v50 = vld [vmem:[#allocation5 + $0xf0] sm:$0xff]  ;;  %v204_v51 = vld [vmem:[#allocation5 + $0x108] sm:$0xff]  ;;  %v206_v55 = vld [vmem:[#allocation5 + $0x118] sm:$0xff] }
  0x57   :  { %v208_v52 = vld [vmem:[#allocation5 + $0x128] sm:$0xff]  ;;  %v3068_v53 = vpack.c.bf16 %v201_v50, %v197_v48  ;;  %v210_v56 = vld [vmem:[#allocation5 + $0x138] sm:$0xff]  ;;  %v203_v57 = vld [vmem:[#allocation5 + $0x100] sm:$0xff] }
  0x58   :  { %2056 = vmatpush1.bf16.msra.mxu0 %v3050_v35  ;;  %v3070_v54 = vpack.c.bf16 %v208_v52, %v204_v51  ;;  %v3072_v58 = vpack.c.bf16 %v210_v56, %v206_v55  ;;  %v207_v59 = vld [vmem:[#allocation5 + $0x120] sm:$0xff]  ;;  %v205_v60 = vld [vmem:[#allocation5 + $0x110] sm:$0xff]  ;;  %v212_v63 = vld [vmem:[#allocation5 + $0x148] sm:$0xff]  ;;  %v2901_v55 = vmov 1   ;;  %v96_v56 = vlaneseq }
  0x59   :  { %2088 = vmatpush1.bf16.msra.mxu1 %v3055_v40  ;;  %2058 = vmatprep.subr.bf16.mxu0 %v3059_v44  ;;  %v209_v61 = vld [vmem:[#allocation5 + $0x130] sm:$0xff]  ;;  %v3075_v62 = vpack.c.bf16 %v207_v59, %v203_v57  ;;  %v216_v0 = vld [vmem:[#allocation5 + $0x168] sm:$0xff]  ;;  %v214_v1 = vld [vmem:[#allocation5 + $0x158] sm:$0xff] }
  0x5a   :  { %2090 = vmatprep.subr.bf16.mxu1 %v3061_v45  ;;  %v3079_v3 = vpack.c.bf16 %v209_v61, %v205_v60  ;;  %v3081_v4 = vpack.c.bf16 %v216_v0, %v212_v63  ;;  %v218_v5 = vld [vmem:[#allocation5 + $0x178] sm:$0xff]  ;;  %v211_v7 = vld [vmem:[#allocation5 + $0x140] sm:$0xff]  ;;  %v213_v12 = vld [vmem:[#allocation5 + $0x150] sm:$0xff]  ;;  %2638 = vset.pattern.permute.xlu0 %v2901_v55  ;;  %v3123_v57 = vshrl.u32 %v96_v56, 7 }
  0x5b   :  { %v215_v8 = vld [vmem:[#allocation5 + $0x160] sm:$0xff]  ;;  %v3084_v9 = vpack.c.bf16 %v218_v5, %v214_v1  ;;  %v217_v13 = vld [vmem:[#allocation5 + $0x170] sm:$0xff]  ;;  %v220_v15 = vld [vmem:[#allocation5 + $0x188] sm:$0xff]  ;;  %160 = vperm.xlu0 %2638, %v3019_v2  }
  0x5c   :  { %2060 = vmatpush1.bf16.msra.mxu0 %v3064_v49  ;;  %v224_v16 = vld [vmem:[#allocation5 + $0x1a8] sm:$0xff]  ;;  %v222_v17 = vld [vmem:[#allocation5 + $0x198] sm:$0xff]  ;;  %v3087_v20 = vpack.c.bf16 %v215_v8, %v211_v7  ;;  %v3091_v21 = vpack.c.bf16 %v217_v13, %v213_v12  ;;  %v219_v25 = vld [vmem:[#allocation5 + $0x180] sm:$0xff]  ;;  %v3126_v59 = vsub.s32 0, %v3123_v57  ;;  %v3134_v61 = vsub.s32 2, %v3123_v57 }
  0x5d   :  { %2092 = vmatpush1.bf16.msra.mxu1 %v3068_v53  ;;  %2062 = vmatprep.subr.bf16.mxu0 %v3070_v54  ;;  %v226_v19 = vld [vmem:[#allocation5 + $0x1b8] sm:$0xff]  ;;  %v3093_v24 = vpack.c.bf16 %v224_v16, %v220_v15  ;;  %v223_v27 = vld [vmem:[#allocation5 + $0x1a0] sm:$0xff]  ;;  %v221_v28 = vld [vmem:[#allocation5 + $0x190] sm:$0xff]  ;;  %v3155_v12 = vsub.s32 3, %v3123_v57 }
  0x5e   :  { %2094 = vmatprep.subr.bf16.mxu1 %v3072_v58  ;;  %v3096_v29 = vpack.c.bf16 %v226_v19, %v222_v17  ;;  %v225_v31 = vld [vmem:[#allocation5 + $0x1b0] sm:$0xff]  ;;  %v228_v32 = vld [vmem:[#allocation5 + $0x1c8] sm:$0xff]  ;;  %v230_v36 = vld [vmem:[#allocation5 + $0x1d8] sm:$0xff]  ;;  %v3099_v38 = vpack.c.bf16 %v223_v27, %v219_v25 }
  0x5f   :  { %v232_v33 = vld [vmem:[#allocation5 + $0x1e8] sm:$0xff]  ;;  %v234_v37 = vld [vmem:[#allocation5 + $0x1f8] sm:$0xff]  ;;  %v3103_v41 = vpack.c.bf16 %v225_v31, %v221_v28  ;;  %v227_v43 = vld [vmem:[#allocation5 + $0x1c0] sm:$0xff]  ;;  %3510 = vst [vmem:[#allocation13_spill] sm:$0xff] %v3155_v12 }
  0x60   :  { %2064 = vmatpush1.bf16.msra.mxu0 %v3075_v62  ;;  %v3105_v42 = vpack.c.bf16 %v232_v33, %v228_v32  ;;  %v231_v46 = vld [vmem:[#allocation5 + $0x1e0] sm:$0xff]  ;;  %v3108_v47 = vpack.c.bf16 %v234_v37, %v230_v36  ;;  %v229_v48 = vld [vmem:[#allocation5 + $0x1d0] sm:$0xff] }
  0x61   :  { %2096 = vmatpush1.bf16.msra.mxu1 %v3079_v3  ;;  %2066 = vmatprep.subr.bf16.mxu0 %v3081_v4  ;;  %v233_v50 = vld [vmem:[#allocation5 + $0x1f0] sm:$0xff]  ;;  %v3111_v51 = vpack.c.bf16 %v231_v46, %v227_v43 }
  0x62   :  { %2098 = vmatprep.subr.bf16.mxu1 %v3084_v9  ;;  %v3115_v52 = vpack.c.bf16 %v233_v50, %v229_v48  ;;  %v3131_v60 = vld [vmem:[%s3497_s1] sm:$0xf] }
  0x63   :  { %v3139_v63 = vld [vmem:[%s3499_s3] sm:$0xf]  ;;  %v3143_v0 = vrot.slane %v3131_v60, %v3126_v59  ;;  %v3147_v1 = vrot.slane %v3131_v60, %v3134_v61  ;;  %v3165_v19 = vrot.slane %v3131_v60, %v3155_v12 }
  0x64   :  { %2068 = vmatpush1.bf16.msra.mxu0 %v3087_v20  ;;  %v3151_v5 = vrot.slane %v3139_v63, %v3126_v59  ;;  %v3160_v15 = vrot.slane %v3139_v63, %v3134_v61  ;;  %v3171_v28 = vrot.slane %v3139_v63, %v3155_v12 }
  0x65   :  { %2100 = vmatpush1.bf16.msra.mxu1 %v3091_v21  ;;  %2070 = vmatprep.subr.bf16.mxu0 %v3093_v24 }
  0x66   :  { %2102 = vmatprep.subr.bf16.mxu1 %v3096_v29 }
  0x68   :  { %2072 = vmatpush1.bf16.msra.mxu0 %v3099_v38 }
  0x69   :  { %2104 = vmatpush1.bf16.msra.mxu1 %v3103_v41  ;;  %2074 = vmatprep.subr.bf16.mxu0 %v3105_v42 }
  0x6a   :  { %2106 = vmatprep.subr.bf16.mxu1 %v3108_v47 }
  0x6c   :  { %2076 = vmatpush1.bf16.msra.mxu0 %v3111_v51 }
  0x6d   :  { %2108 = vmatpush1.bf16.msra.mxu1 %v3115_v52  ;;  %2110 = vmatprep.subr.bf16.mxu0 %v3022_v6 }
  0x6e   :  { %2142 = vmatprep.subr.bf16.mxu1 %v3024_v10 }
  0xcc   :  { %v93_v7 = vpop.permute.xlu0 %92 }
  0xcd   :  { %v116_v8 = vmul.f32 %v3143_v0, %v93_v7  ;;  %v117_v13 = vmul.f32 %v3147_v1, %v93_v7  ;;  %v118_v27 = vmul.f32 %v3165_v19, %v93_v7 }
  0xcf   :  { %v140_v16 = vadd.f32 %v3151_v5, %v116_v8  ;;  %v141_v25 = vadd.f32 %v3160_v15, %v117_v13  ;;  %v142_v32 = vadd.f32 %v3171_v28, %v118_v27  ;;  %v2902_v8 = vmov 2  }
  0xd0   :  { %2639 = vset.pattern.permute.xlu1 %v2902_v8  ;;  %v3213_v13 = vsub.s32 1, %v3123_v57 }
  0xd1   :  { %v2015_v17 = vmul.f32 -1.442695, %v140_v16  ;;  %v2016_v31 = vmul.f32 -1.442695, %v141_v25  ;;  %406 = vperm.xlu1 %2639, %v3019_v2  }
  0xd2   :  { %3511 = vst [vmem:[#allocation14_spill] sm:$0xff] %v3213_v13  ;;  %v3222_v27 = vrot.slane %v3139_v63, %v3213_v13 }
  0xd3   :  { %2646 = vpow2.f32 %v2015_v17  ;;  %v3217_v17 = vrot.slane %v3131_v60, %v3213_v13 }
  0xd4   :  { %2648 = vpow2.f32 %v2016_v31 }
  0xd5   :  { %2650 = vtanh.f32 %v142_v32 }
  0xda   :  { %v161_v16 = vpop.permute.xlu0 %160 }
  0xdb   :  { %v163_v25 = vmul.f32 %v161_v16, %v3143_v0  ;;  %v164_v31 = vmul.f32 %v161_v16, %v3217_v17 }
  0xdd   :  { %v2647_v33 = vpop.eup %2646  ;;  %v167_v32 = vadd.f32 %v163_v25, %v3151_v5 }
  0xde   :  { %v146_v36 = vadd.f32 1.0, %v2647_v33  ;;  %v2649_v37 = vpop.eup %2648  ;;  %v168_v33 = vadd.f32 %v164_v31, %v3222_v27 }
  0xdf   :  { %v152_v43 = vadd.f32 1.0, %v2649_v37  ;;  %v2651_v46 = vpop.eup %2650 }
  0xe0   :  { %2652 = vrcp.f32 %v146_v36 }
  0xe1   :  { %2654 = vrcp.f32 %v152_v43  ;;  %v165_v43 = vmul.f32 %v161_v16, %v3147_v1 }
  0xe3   :  { %v169_v63 = vadd.f32 %v165_v43, %v3160_v15 }
  0xea   :  { %v2653_v48 = vpop.eup %2652 }
  0xeb   :  { %v3174_v50 = vmul.f32 %v2653_v48, %v2651_v46  ;;  %v2655_v55 = vpop.eup %2654 }
  0xed   :  { %2656 = vtanh.f32 %v3174_v50 }
  0xf7   :  { %v2657_v56 = vpop.eup %2656 }
  0xf8   :  { %v158_v7 = vmul.f32 %v2657_v56, %v2655_v55 }
  0xfa   :  { %300 = vmatmul.mubr.f32.vlgmr.msra.gmra.mrb[0].mxu0 %v158_v7  ;;  %371 = vmatmul.mubr.f32.vlgmr.msra.gmra.mrb[0].mxu1 %v158_v7  ;;  %v166_v7 = vmul.f32 %v161_v16, %v3165_v19 }
  0xfb   :  { %2112 = vmatpush1.bf16.msra.mxu0 %v3026_v11  ;;  %2144 = vmatpush1.bf16.msra.mxu1 %v3029_v14 }
  0xfc   :  { %2114 = vmatprep.subr.bf16.mxu0 %v3034_v18  ;;  %2146 = vmatprep.subr.bf16.mxu1 %v3036_v22  ;;  %v170_v8 = vadd.f32 %v166_v7, %v3171_v28 }
  0xfd   :  { %481 = vmatprep.mubr.f32.mxu0 %v3506_v39  ;;  %552 = vmatprep.mubr.f32.mxu1 %v3506_v39 }
  0xff   :  { %2116 = vmatpush1.bf16.msra.mxu0 %v3038_v23  ;;  %2148 = vmatpush1.bf16.msra.mxu1 %v3041_v26 }
 0x100   :  { %2118 = vmatprep.subr.bf16.mxu0 %v3046_v30  ;;  %2150 = vmatprep.subr.bf16.mxu1 %v3048_v34 }
 0x103   :  { %2120 = vmatpush1.bf16.msra.mxu0 %v3050_v35  ;;  %2152 = vmatpush1.bf16.msra.mxu1 %v3055_v40 }
 0x104   :  { %2122 = vmatprep.subr.bf16.mxu0 %v3059_v44  ;;  %2154 = vmatprep.subr.bf16.mxu1 %v3061_v45 }
 0x107   :  { %2124 = vmatpush1.bf16.msra.mxu0 %v3064_v49  ;;  %2156 = vmatpush1.bf16.msra.mxu1 %v3068_v53 }
 0x108   :  { %2126 = vmatprep.subr.bf16.mxu0 %v3070_v54  ;;  %2158 = vmatprep.subr.bf16.mxu1 %v3072_v58 }
 0x10b   :  { %2128 = vmatpush1.bf16.msra.mxu0 %v3075_v62  ;;  %2160 = vmatpush1.bf16.msra.mxu1 %v3079_v3 }
 0x10c   :  { %2130 = vmatprep.subr.bf16.mxu0 %v3081_v4  ;;  %2162 = vmatprep.subr.bf16.mxu1 %v3084_v9 }
 0x10f   :  { %2132 = vmatpush1.bf16.msra.mxu0 %v3087_v20  ;;  %2164 = vmatpush1.bf16.msra.mxu1 %v3091_v21 }
 0x110   :  { %2134 = vmatprep.subr.bf16.mxu0 %v3093_v24  ;;  %2166 = vmatprep.subr.bf16.mxu1 %v3096_v29 }
 0x113   :  { %2136 = vmatpush1.bf16.msra.mxu0 %v3099_v38  ;;  %2168 = vmatpush1.bf16.msra.mxu1 %v3103_v41 }
 0x114   :  { %2138 = vmatprep.subr.bf16.mxu0 %v3105_v42  ;;  %2170 = vmatprep.subr.bf16.mxu1 %v3108_v47 }
 0x117   :  { %2140 = vmatpush1.bf16.msra.mxu0 %v3111_v51  ;;  %2172 = vmatpush1.bf16.msra.mxu1 %v3115_v52 }
 0x118   :  { %2174 = vmatprep.subr.bf16.mxu0 %v3022_v6  ;;  %2206 = vmatprep.subr.bf16.mxu1 %v3024_v10 }
 0x1cd   :  { %v301_v36 = vpop.f32.mrb[0].mxu0  ;;  %v372_v57 = vpop.f32.mrb[0].mxu1 }
 0x1ce   :  { %v377_v37 = vadd.f32 %v301_v36, %v167_v32  ;;  %v303_v46 = vpop.f32.mrb[1].mxu0  ;;  %v374_v60 = vpop.f32.mrb[1].mxu1  ;;  %v379_v25 = vadd.f32 %v372_v57, %v169_v63 }
 0x1cf   :  { %v378_v48 = vadd.f32 %v303_v46, %v168_v33  ;;  %v380_v31 = vadd.f32 %v374_v60, %v170_v8  ;;  %v407_v63 = vpop.permute.xlu1 %406 }
 0x1d0   :  { %v2017_v55 = vmul.f32 -1.442695, %v377_v37  ;;  %v2019_v39 = vmul.f32 -1.442695, %v379_v25  ;;  %v409_v8 = vmul.f32 %v407_v63, %v3143_v0  ;;  %v410_v25 = vmul.f32 %v407_v63, %v3217_v17 }
 0x1d1   :  { %v2018_v56 = vmul.f32 -1.442695, %v378_v48 }
 0x1d2   :  { %2658 = vpow2.f32 %v2017_v55 }
 0x1d3   :  { %2660 = vpow2.f32 %v2018_v56 }
 0x1d4   :  { %2662 = vtanh.f32 %v380_v31  ;;  %v413_v31 = vadd.f32 %v409_v8, %v3151_v5 }
 0x1d5   :  { %2664 = vpow2.f32 %v2019_v39  ;;  %v3512_v39 = vmov 0.0  }
 0x1dc   :  { %v2659_v13 = vpop.eup %2658 }
 0x1dd   :  { %v390_v32 = vadd.f32 1.0, %v2659_v13  ;;  %v2661_v36 = vpop.eup %2660 }
 0x1de   :  { %v391_v33 = vadd.f32 1.0, %v2661_v36  ;;  %v2663_v37 = vpop.eup %2662 }
 0x1df   :  { %2666 = vrcp.f32 %v390_v32  ;;  %v2665_v46 = vpop.eup %2664  ;;  %v414_v32 = vadd.f32 %v410_v25, %v3222_v27 }
 0x1e0   :  { %2668 = vrcp.f32 %v391_v33  ;;  %v392_v43 = vadd.f32 1.0, %v2665_v46  ;;  %v411_v46 = vmul.f32 %v407_v63, %v3147_v1 }
 0x1e2   :  { %2670 = vrcp.f32 %v392_v43 }
 0x1e9   :  { %v2667_v16 = vpop.eup %2666 }
 0x1ea   :  { %v401_v48 = vmul.f32 %v2667_v16, %v2663_v37  ;;  %v2669_v55 = vpop.eup %2668 }
 0x1eb   :  { %v400_v56 = vmul.f32 %v2669_v55, %v3174_v50  ;;  %v2903_v50 = vmov 3  }
 0x1ec   :  { %v2671_v13 = vpop.eup %2670  ;;  %2640 = vset.pattern.permute.xlu1 %v2903_v50 }
 0x1ed   :  { %v3232_v7 = vadd.f32 %v401_v48, %v400_v56  ;;  %588 = vperm.xlu1 %2640, %v3019_v2  }
 0x1ef   :  { %2672 = vtanh.f32 %v3232_v7 }
 0x1f9   :  { %v2673_v57 = vpop.eup %2672 }
 0x1fa   :  { %v404_v60 = vmul.f32 %v2673_v57, %v2671_v13  ;;  %v412_v13 = vmul.f32 %v407_v63, %v3165_v19  ;;  %v415_v57 = vadd.f32 %v411_v46, %v3160_v15 }
 0x1fc   :  { %482 = vmatmul.mubr.f32.vlgmr.msra.gmra.mrb[2].mxu0 %v404_v60  ;;  %553 = vmatmul.mubr.f32.vlgmr.msra.gmra.mrb[2].mxu1 %v404_v60  ;;  %v416_v60 = vadd.f32 %v412_v13, %v3171_v28 }
 0x1fd   :  { %2176 = vmatpush1.bf16.msra.mxu0 %v3026_v11  ;;  %2208 = vmatpush1.bf16.msra.mxu1 %v3029_v14 }
 0x1fe   :  { %2178 = vmatprep.subr.bf16.mxu0 %v3034_v18  ;;  %2210 = vmatprep.subr.bf16.mxu1 %v3036_v22 }
 0x1ff   :  { %663 = vmatprep.mubr.f32.mxu0 %v3512_v39  ;;  %734 = vmatprep.mubr.f32.mxu1 %v3512_v39 }
 0x201   :  { %2180 = vmatpush1.bf16.msra.mxu0 %v3038_v23  ;;  %2212 = vmatpush1.bf16.msra.mxu1 %v3041_v26 }
 0x202   :  { %2182 = vmatprep.subr.bf16.mxu0 %v3046_v30  ;;  %2214 = vmatprep.subr.bf16.mxu1 %v3048_v34 }
 0x205   :  { %2184 = vmatpush1.bf16.msra.mxu0 %v3050_v35  ;;  %2216 = vmatpush1.bf16.msra.mxu1 %v3055_v40 }
 0x206   :  { %2186 = vmatprep.subr.bf16.mxu0 %v3059_v44  ;;  %2218 = vmatprep.subr.bf16.mxu1 %v3061_v45 }
 0x209   :  { %2188 = vmatpush1.bf16.msra.mxu0 %v3064_v49  ;;  %2220 = vmatpush1.bf16.msra.mxu1 %v3068_v53 }
 0x20a   :  { %2190 = vmatprep.subr.bf16.mxu0 %v3070_v54  ;;  %2222 = vmatprep.subr.bf16.mxu1 %v3072_v58 }
 0x20d   :  { %2192 = vmatpush1.bf16.msra.mxu0 %v3075_v62  ;;  %2224 = vmatpush1.bf16.msra.mxu1 %v3079_v3 }
 0x20e   :  { %2194 = vmatprep.subr.bf16.mxu0 %v3081_v4  ;;  %2226 = vmatprep.subr.bf16.mxu1 %v3084_v9 }
 0x211   :  { %2196 = vmatpush1.bf16.msra.mxu0 %v3087_v20  ;;  %2228 = vmatpush1.bf16.msra.mxu1 %v3091_v21 }
 0x212   :  { %2198 = vmatprep.subr.bf16.mxu0 %v3093_v24  ;;  %2230 = vmatprep.subr.bf16.mxu1 %v3096_v29 }
 0x215   :  { %2200 = vmatpush1.bf16.msra.mxu0 %v3099_v38  ;;  %2232 = vmatpush1.bf16.msra.mxu1 %v3103_v41 }
 0x216   :  { %2202 = vmatprep.subr.bf16.mxu0 %v3105_v42  ;;  %2234 = vmatprep.subr.bf16.mxu1 %v3108_v47 }
 0x219   :  { %2204 = vmatpush1.bf16.msra.mxu0 %v3111_v51  ;;  %2236 = vmatpush1.bf16.msra.mxu1 %v3115_v52 }
 0x21a   :  { %2238 = vmatprep.subr.bf16.mxu0 %v3022_v6  ;;  %2270 = vmatprep.subr.bf16.mxu1 %v3024_v10 }
 0x2cf   :  { %v483_v36 = vpop.f32.mrb[2].mxu0  ;;  %v554_v33 = vpop.f32.mrb[2].mxu1 }
 0x2d0   :  { %v559_v37 = vadd.f32 %v483_v36, %v413_v31  ;;  %v485_v16 = vpop.f32.mrb[3].mxu0  ;;  %v556_v48 = vpop.f32.mrb[3].mxu1  ;;  %v561_v50 = vadd.f32 %v554_v33, %v415_v57 }
 0x2d1   :  { %v560_v55 = vadd.f32 %v485_v16, %v414_v32  ;;  %v562_v8 = vadd.f32 %v556_v48, %v416_v60  ;;  %v589_v57 = vpop.permute.xlu1 %588 }
 0x2d2   :  { %v2020_v43 = vmul.f32 -1.442695, %v559_v37  ;;  %v2022_v25 = vmul.f32 -1.442695, %v561_v50  ;;  %v591_v60 = vmul.f32 %v589_v57, %v3143_v0  ;;  %v592_v50 = vmul.f32 %v589_v57, %v3217_v17 }
 0x2d3   :  { %v2021_v56 = vmul.f32 -1.442695, %v560_v55 }
 0x2d4   :  { %2674 = vpow2.f32 %v2020_v43 }
 0x2d5   :  { %2676 = vpow2.f32 %v2021_v56 }
 0x2d6   :  { %2678 = vtanh.f32 %v562_v8  ;;  %v595_v8 = vadd.f32 %v591_v60, %v3151_v5 }
 0x2d7   :  { %2680 = vpow2.f32 %v2022_v25  ;;  %v596_v25 = vadd.f32 %v592_v50, %v3222_v27 }
 0x2de   :  { %v2675_v12 = vpop.eup %2674 }
 0x2df   :  { %v572_v31 = vadd.f32 1.0, %v2675_v12  ;;  %v2677_v36 = vpop.eup %2676 }
 0x2e0   :  { %v573_v32 = vadd.f32 1.0, %v2677_v36  ;;  %v2679_v37 = vpop.eup %2678 }
 0x2e1   :  { %2682 = vrcp.f32 %v572_v31  ;;  %v2681_v16 = vpop.eup %2680 }
 0x2e2   :  { %2684 = vrcp.f32 %v573_v32  ;;  %v574_v46 = vadd.f32 1.0, %v2681_v16 }
 0x2e4   :  { %2686 = vrcp.f32 %v574_v46 }
 0x2eb   :  { %v2683_v63 = vpop.eup %2682 }
 0x2ec   :  { %v583_v55 = vmul.f32 %v2683_v63, %v2679_v37  ;;  %v2685_v43 = vpop.eup %2684  ;;  %v593_v37 = vmul.f32 %v589_v57, %v3147_v1 }
 0x2ed   :  { %v582_v56 = vmul.f32 %v2685_v43, %v3232_v7  ;;  %v2904_v7 = vmov 4  }
 0x2ee   :  { %v2687_v12 = vpop.eup %2686  ;;  %2641 = vset.pattern.permute.xlu1 %v2904_v7 }
 0x2ef   :  { %v3279_v13 = vadd.f32 %v583_v55, %v582_v56  ;;  %770 = vperm.xlu1 %2641, %v3019_v2   ;;  %v594_v56 = vmul.f32 %v589_v57, %v3165_v19 }
 0x2f1   :  { %2688 = vtanh.f32 %v3279_v13 }
 0x2fb   :  { %v2689_v33 = vpop.eup %2688 }
 0x2fc   :  { %v586_v48 = vmul.f32 %v2689_v33, %v2687_v12  ;;  %v597_v12 = vadd.f32 %v593_v37, %v3160_v15  ;;  %v598_v33 = vadd.f32 %v594_v56, %v3171_v28 }
 0x2fe   :  { %664 = vmatmul.mubr.f32.vlgmr.msra.gmra.mrb[4].mxu0 %v586_v48  ;;  %735 = vmatmul.mubr.f32.vlgmr.msra.gmra.mrb[4].mxu1 %v586_v48 }
 0x2ff   :  { %2240 = vmatpush1.bf16.msra.mxu0 %v3026_v11  ;;  %2272 = vmatpush1.bf16.msra.mxu1 %v3029_v14 }
 0x300   :  { %2242 = vmatprep.subr.bf16.mxu0 %v3034_v18  ;;  %2274 = vmatprep.subr.bf16.mxu1 %v3036_v22 }
 0x301   :  { %845 = vmatprep.mubr.f32.mxu0 %v3512_v39  ;;  %916 = vmatprep.mubr.f32.mxu1 %v3512_v39 }
 0x303   :  { %2244 = vmatpush1.bf16.msra.mxu0 %v3038_v23  ;;  %2276 = vmatpush1.bf16.msra.mxu1 %v3041_v26 }
 0x304   :  { %2246 = vmatprep.subr.bf16.mxu0 %v3046_v30  ;;  %2278 = vmatprep.subr.bf16.mxu1 %v3048_v34 }
 0x307   :  { %2248 = vmatpush1.bf16.msra.mxu0 %v3050_v35  ;;  %2280 = vmatpush1.bf16.msra.mxu1 %v3055_v40 }
 0x308   :  { %2250 = vmatprep.subr.bf16.mxu0 %v3059_v44  ;;  %2282 = vmatprep.subr.bf16.mxu1 %v3061_v45 }
 0x30b   :  { %2252 = vmatpush1.bf16.msra.mxu0 %v3064_v49  ;;  %2284 = vmatpush1.bf16.msra.mxu1 %v3068_v53 }
 0x30c   :  { %2254 = vmatprep.subr.bf16.mxu0 %v3070_v54  ;;  %2286 = vmatprep.subr.bf16.mxu1 %v3072_v58 }
 0x30f   :  { %2256 = vmatpush1.bf16.msra.mxu0 %v3075_v62  ;;  %2288 = vmatpush1.bf16.msra.mxu1 %v3079_v3 }
 0x310   :  { %2258 = vmatprep.subr.bf16.mxu0 %v3081_v4  ;;  %2290 = vmatprep.subr.bf16.mxu1 %v3084_v9 }
 0x313   :  { %2260 = vmatpush1.bf16.msra.mxu0 %v3087_v20  ;;  %2292 = vmatpush1.bf16.msra.mxu1 %v3091_v21 }
 0x314   :  { %2262 = vmatprep.subr.bf16.mxu0 %v3093_v24  ;;  %2294 = vmatprep.subr.bf16.mxu1 %v3096_v29 }
 0x317   :  { %2264 = vmatpush1.bf16.msra.mxu0 %v3099_v38  ;;  %2296 = vmatpush1.bf16.msra.mxu1 %v3103_v41 }
 0x318   :  { %2266 = vmatprep.subr.bf16.mxu0 %v3105_v42  ;;  %2298 = vmatprep.subr.bf16.mxu1 %v3108_v47 }
 0x31b   :  { %2268 = vmatpush1.bf16.msra.mxu0 %v3111_v51  ;;  %2300 = vmatpush1.bf16.msra.mxu1 %v3115_v52 }
 0x31c   :  { %2302 = vmatprep.subr.bf16.mxu0 %v3022_v6  ;;  %2334 = vmatprep.subr.bf16.mxu1 %v3024_v10 }
 0x3d1   :  { %v665_v31 = vpop.f32.mrb[4].mxu0  ;;  %v736_v36 = vpop.f32.mrb[4].mxu1 }
 0x3d2   :  { %v741_v32 = vadd.f32 %v665_v31, %v595_v8  ;;  %v667_v16 = vpop.f32.mrb[5].mxu0  ;;  %v738_v63 = vpop.f32.mrb[5].mxu1  ;;  %v743_v48 = vadd.f32 %v736_v36, %v597_v12 }
 0x3d3   :  { %v742_v55 = vadd.f32 %v667_v16, %v596_v25  ;;  %v744_v7 = vadd.f32 %v738_v63, %v598_v33  ;;  %v771_v33 = vpop.permute.xlu1 %770 }
 0x3d4   :  { %v2023_v43 = vmul.f32 -1.442695, %v741_v32  ;;  %v2025_v60 = vmul.f32 -1.442695, %v743_v48  ;;  %v773_v48 = vmul.f32 %v771_v33, %v3143_v0 }
 0x3d5   :  { %v2024_v46 = vmul.f32 -1.442695, %v742_v55 }
 0x3d6   :  { %2690 = vpow2.f32 %v2023_v43 }
 0x3d7   :  { %2692 = vpow2.f32 %v2024_v46 }
 0x3d8   :  { %2694 = vtanh.f32 %v744_v7  ;;  %v774_v7 = vmul.f32 %v771_v33, %v3217_v17 }
 0x3d9   :  { %2696 = vpow2.f32 %v2025_v60  ;;  %v777_v60 = vadd.f32 %v773_v48, %v3151_v5 }
 0x3e0   :  { %v2691_v50 = vpop.eup %2690 }
 0x3e1   :  { %v754_v8 = vadd.f32 1.0, %v2691_v50  ;;  %v2693_v31 = vpop.eup %2692  ;;  %v778_v50 = vadd.f32 %v774_v7, %v3222_v27 }
 0x3e2   :  { %v755_v25 = vadd.f32 1.0, %v2693_v31  ;;  %v2695_v32 = vpop.eup %2694 }
 0x3e3   :  { %2698 = vrcp.f32 %v754_v8  ;;  %v2697_v16 = vpop.eup %2696 }
 0x3e4   :  { %2700 = vrcp.f32 %v755_v25  ;;  %v756_v37 = vadd.f32 1.0, %v2697_v16 }
 0x3e6   :  { %2702 = vrcp.f32 %v756_v37 }
 0x3ed   :  { %v2699_v57 = vpop.eup %2698 }
 0x3ee   :  { %v765_v55 = vmul.f32 %v2699_v57, %v2695_v32  ;;  %v2701_v43 = vpop.eup %2700  ;;  %v775_v32 = vmul.f32 %v771_v33, %v3147_v1 }
 0x3ef   :  { %v764_v46 = vmul.f32 %v2701_v43, %v3279_v13  ;;  %v2905_v13 = vmov 5  }
 0x3f0   :  { %v2703_v36 = vpop.eup %2702  ;;  %2642 = vset.pattern.permute.xlu0 %v2905_v13 }
 0x3f1   :  { %v3326_v56 = vadd.f32 %v765_v55, %v764_v46  ;;  %952 = vperm.xlu0 %2642, %v3019_v2   ;;  %v776_v2 = vmul.f32 %v771_v33, %v3165_v19  ;;  %v779_v46 = vadd.f32 %v775_v32, %v3160_v15 }
 0x3f3   :  { %2704 = vtanh.f32 %v3326_v56 }
 0x3fd   :  { %v2705_v63 = vpop.eup %2704 }
 0x3fe   :  { %v768_v12 = vmul.f32 %v2705_v63, %v2703_v36  ;;  %v780_v36 = vadd.f32 %v776_v2, %v3171_v28 }
 0x400   :  { %846 = vmatmul.mubr.f32.vlgmr.msra.gmra.mrb[6].mxu0 %v768_v12  ;;  %917 = vmatmul.mubr.f32.vlgmr.msra.gmra.mrb[6].mxu1 %v768_v12 }
 0x401   :  { %2304 = vmatpush1.bf16.msra.mxu0 %v3026_v11  ;;  %2336 = vmatpush1.bf16.msra.mxu1 %v3029_v14 }
 0x402   :  { %2306 = vmatprep.subr.bf16.mxu0 %v3034_v18  ;;  %2338 = vmatprep.subr.bf16.mxu1 %v3036_v22 }
 0x403   :  { %1027 = vmatprep.mubr.f32.mxu0 %v3512_v39  ;;  %1098 = vmatprep.mubr.f32.mxu1 %v3512_v39 }
 0x405   :  { %2308 = vmatpush1.bf16.msra.mxu0 %v3038_v23  ;;  %2340 = vmatpush1.bf16.msra.mxu1 %v3041_v26 }
 0x406   :  { %2310 = vmatprep.subr.bf16.mxu0 %v3046_v30  ;;  %2342 = vmatprep.subr.bf16.mxu1 %v3048_v34 }
 0x409   :  { %2312 = vmatpush1.bf16.msra.mxu0 %v3050_v35  ;;  %2344 = vmatpush1.bf16.msra.mxu1 %v3055_v40 }
 0x40a   :  { %2314 = vmatprep.subr.bf16.mxu0 %v3059_v44  ;;  %2346 = vmatprep.subr.bf16.mxu1 %v3061_v45 }
 0x40d   :  { %2316 = vmatpush1.bf16.msra.mxu0 %v3064_v49  ;;  %2348 = vmatpush1.bf16.msra.mxu1 %v3068_v53 }
 0x40e   :  { %2318 = vmatprep.subr.bf16.mxu0 %v3070_v54  ;;  %2350 = vmatprep.subr.bf16.mxu1 %v3072_v58 }
 0x411   :  { %2320 = vmatpush1.bf16.msra.mxu0 %v3075_v62  ;;  %2352 = vmatpush1.bf16.msra.mxu1 %v3079_v3 }
 0x412   :  { %2322 = vmatprep.subr.bf16.mxu0 %v3081_v4  ;;  %2354 = vmatprep.subr.bf16.mxu1 %v3084_v9 }
 0x415   :  { %2324 = vmatpush1.bf16.msra.mxu0 %v3087_v20  ;;  %2356 = vmatpush1.bf16.msra.mxu1 %v3091_v21 }
 0x416   :  { %2326 = vmatprep.subr.bf16.mxu0 %v3093_v24  ;;  %2358 = vmatprep.subr.bf16.mxu1 %v3096_v29 }
 0x419   :  { %2328 = vmatpush1.bf16.msra.mxu0 %v3099_v38  ;;  %2360 = vmatpush1.bf16.msra.mxu1 %v3103_v41 }
 0x41a   :  { %2330 = vmatprep.subr.bf16.mxu0 %v3105_v42  ;;  %2362 = vmatprep.subr.bf16.mxu1 %v3108_v47 }
 0x41d   :  { %2332 = vmatpush1.bf16.msra.mxu0 %v3111_v51  ;;  %2364 = vmatpush1.bf16.msra.mxu1 %v3115_v52 }
 0x41e   :  { %2366 = vmatprep.subr.bf16.mxu0 %v3022_v6  ;;  %2398 = vmatprep.subr.bf16.mxu1 %v3024_v10 }
 0x4d3   :  { %v847_v8 = vpop.f32.mrb[6].mxu0  ;;  %v918_v31 = vpop.f32.mrb[6].mxu1 }
 0x4d4   :  { %v923_v25 = vadd.f32 %v847_v8, %v777_v60  ;;  %v849_v16 = vpop.f32.mrb[7].mxu0  ;;  %v920_v57 = vpop.f32.mrb[7].mxu1  ;;  %v925_v63 = vadd.f32 %v918_v31, %v779_v46  ;;  %v3410_v46 = vld [vmem:[#allocation3] sm:$0xff] }
 0x4d5   :  { %v924_v55 = vadd.f32 %v849_v16, %v778_v50  ;;  %v926_v12 = vadd.f32 %v920_v57, %v780_v36  ;;  %v953_v36 = vpop.permute.xlu0 %952 }
 0x4d6   :  { %v2026_v43 = vmul.f32 -1.442695, %v923_v25  ;;  %v2028_v13 = vmul.f32 -1.442695, %v925_v63  ;;  %v955_v63 = vmul.f32 %v953_v36, %v3143_v0 }
 0x4d7   :  { %v2027_v37 = vmul.f32 -1.442695, %v924_v55 }
 0x4d8   :  { %2706 = vpow2.f32 %v2026_v43 }
 0x4d9   :  { %2708 = vpow2.f32 %v2027_v37 }
 0x4da   :  { %2710 = vtanh.f32 %v926_v12  ;;  %v956_v12 = vmul.f32 %v953_v36, %v3217_v17 }
 0x4db   :  { %2712 = vpow2.f32 %v2028_v13  ;;  %v959_v13 = vadd.f32 %v955_v63, %v3151_v5 }
 0x4e2   :  { %v2707_v48 = vpop.eup %2706 }
 0x4e3   :  { %v936_v7 = vadd.f32 1.0, %v2707_v48  ;;  %v2709_v60 = vpop.eup %2708  ;;  %v960_v48 = vadd.f32 %v956_v12, %v3222_v27 }
 0x4e4   :  { %v937_v50 = vadd.f32 1.0, %v2709_v60  ;;  %v2711_v8 = vpop.eup %2710 }
 0x4e5   :  { %2714 = vrcp.f32 %v936_v7  ;;  %v2713_v25 = vpop.eup %2712 }
 0x4e6   :  { %2716 = vrcp.f32 %v937_v50  ;;  %v938_v32 = vadd.f32 1.0, %v2713_v25 }
 0x4e8   :  { %2718 = vrcp.f32 %v938_v32 }
 0x4ef   :  { %v2715_v33 = vpop.eup %2714 }
 0x4f0   :  { %v947_v16 = vmul.f32 %v2715_v33, %v2711_v8  ;;  %v2717_v55 = vpop.eup %2716 }
 0x4f1   :  { %v946_v43 = vmul.f32 %v2717_v55, %v3326_v56  ;;  %v2906_v56 = vmov 6   ;;  %v958_v55 = vmul.f32 %v953_v36, %v3165_v19 }
 0x4f2   :  { %v2719_v31 = vpop.eup %2718  ;;  %2643 = vset.pattern.permute.xlu1 %v2906_v56 }
 0x4f3   :  { %v3373_v37 = vadd.f32 %v947_v16, %v946_v43  ;;  %1134 = vperm.xlu1 %2643, %v3410_v46   ;;  %v962_v43 = vadd.f32 %v958_v55, %v3171_v28 }
 0x4f5   :  { %2720 = vtanh.f32 %v3373_v37 }
 0x4ff   :  { %v2721_v57 = vpop.eup %2720 }
 0x500   :  { %v950_v2 = vmul.f32 %v2721_v57, %v2719_v31 }
 0x502   :  { %1028 = vmatmul.mubr.f32.vlgmr.msra.gmra.mrb[8].mxu0 %v950_v2  ;;  %1099 = vmatmul.mubr.f32.vlgmr.msra.gmra.mrb[8].mxu1 %v950_v2 }
 0x503   :  { %2368 = vmatpush1.bf16.msra.mxu0 %v3026_v11  ;;  %2400 = vmatpush1.bf16.msra.mxu1 %v3029_v14 }
 0x504   :  { %2370 = vmatprep.subr.bf16.mxu0 %v3034_v18  ;;  %2402 = vmatprep.subr.bf16.mxu1 %v3036_v22 }
 0x505   :  { %1209 = vmatprep.mubr.f32.mxu0 %v3512_v39  ;;  %1280 = vmatprep.mubr.f32.mxu1 %v3512_v39 }
 0x507   :  { %2372 = vmatpush1.bf16.msra.mxu0 %v3038_v23  ;;  %2404 = vmatpush1.bf16.msra.mxu1 %v3041_v26 }
 0x508   :  { %2374 = vmatprep.subr.bf16.mxu0 %v3046_v30  ;;  %2406 = vmatprep.subr.bf16.mxu1 %v3048_v34 }
 0x50b   :  { %2376 = vmatpush1.bf16.msra.mxu0 %v3050_v35  ;;  %2408 = vmatpush1.bf16.msra.mxu1 %v3055_v40 }
 0x50c   :  { %2378 = vmatprep.subr.bf16.mxu0 %v3059_v44  ;;  %2410 = vmatprep.subr.bf16.mxu1 %v3061_v45 }
 0x50f   :  { %2380 = vmatpush1.bf16.msra.mxu0 %v3064_v49  ;;  %2412 = vmatpush1.bf16.msra.mxu1 %v3068_v53 }
 0x510   :  { %2382 = vmatprep.subr.bf16.mxu0 %v3070_v54  ;;  %2414 = vmatprep.subr.bf16.mxu1 %v3072_v58 }
 0x513   :  { %2384 = vmatpush1.bf16.msra.mxu0 %v3075_v62  ;;  %2416 = vmatpush1.bf16.msra.mxu1 %v3079_v3 }
 0x514   :  { %2386 = vmatprep.subr.bf16.mxu0 %v3081_v4  ;;  %2418 = vmatprep.subr.bf16.mxu1 %v3084_v9 }
 0x517   :  { %2388 = vmatpush1.bf16.msra.mxu0 %v3087_v20  ;;  %2420 = vmatpush1.bf16.msra.mxu1 %v3091_v21 }
 0x518   :  { %2390 = vmatprep.subr.bf16.mxu0 %v3093_v24  ;;  %2422 = vmatprep.subr.bf16.mxu1 %v3096_v29 }
 0x51b   :  { %2392 = vmatpush1.bf16.msra.mxu0 %v3099_v38  ;;  %2424 = vmatpush1.bf16.msra.mxu1 %v3103_v41 }
 0x51c   :  { %2394 = vmatprep.subr.bf16.mxu0 %v3105_v42  ;;  %2426 = vmatprep.subr.bf16.mxu1 %v3108_v47 }
 0x51f   :  { %2396 = vmatpush1.bf16.msra.mxu0 %v3111_v51  ;;  %2428 = vmatpush1.bf16.msra.mxu1 %v3115_v52 }
 0x520   :  { %2430 = vmatprep.subr.bf16.mxu0 %v3022_v6  ;;  %2462 = vmatprep.subr.bf16.mxu1 %v3024_v10  ;;  %v957_v10 = vmul.f32 %v953_v36, %v3147_v1 }
 0x522   :  { %v961_v32 = vadd.f32 %v957_v10, %v3160_v15 }
 0x5d5   :  { %v1029_v7 = vpop.f32.mrb[8].mxu0  ;;  %v1100_v60 = vpop.f32.mrb[8].mxu1 }
 0x5d6   :  { %v1105_v6 = vadd.f32 %v1029_v7, %v959_v13  ;;  %v1031_v50 = vpop.f32.mrb[9].mxu0  ;;  %v1102_v8 = vpop.f32.mrb[9].mxu1  ;;  %v1107_v31 = vadd.f32 %v1100_v60, %v961_v32 }
 0x5d7   :  { %v1106_v25 = vadd.f32 %v1031_v50, %v960_v48  ;;  %v1108_v57 = vadd.f32 %v1102_v8, %v962_v43 }
 0x5d8   :  { %v2029_v33 = vmul.f32 -1.442695, %v1105_v6  ;;  %v2031_v2 = vmul.f32 -1.442695, %v1107_v31 }
 0x5d9   :  { %v2030_v16 = vmul.f32 -1.442695, %v1106_v25 }
 0x5da   :  { %2722 = vpow2.f32 %v2029_v33 }
 0x5db   :  { %2724 = vpow2.f32 %v2030_v16 }
 0x5dc   :  { %2726 = vtanh.f32 %v1108_v57  ;;  %v1499_v57 = vld [vmem:[#allocation7 + $0x8] sm:$0xff] }
 0x5dd   :  { %2728 = vpow2.f32 %v2031_v2  ;;  %v1503_v2 = vld [vmem:[#allocation7 + $0x28] sm:$0xff] }
 0x5e4   :  { %v2723_v56 = vpop.eup %2722 }
 0x5e5   :  { %v1118_v63 = vadd.f32 1.0, %v2723_v56  ;;  %v2725_v12 = vpop.eup %2724  ;;  %v1501_v56 = vld [vmem:[#allocation7 + $0x18] sm:$0xff] }
 0x5e6   :  { %v1119_v13 = vadd.f32 1.0, %v2725_v12  ;;  %v2727_v48 = vpop.eup %2726  ;;  %v1505_v12 = vld [vmem:[#allocation7 + $0x38] sm:$0xff] }
 0x5e7   :  { %2730 = vrcp.f32 %v1118_v63  ;;  %v2729_v7 = vpop.eup %2728  ;;  %v2493_v63 = vpack.c.bf16 %v1503_v2, %v1499_v57  ;;  %v1537_v57 = vld [vmem:[#allocation7 + $0x138] sm:$0xff]  ;;  %v1530_v2 = vld [vmem:[#allocation7 + $0x100] sm:$0xff] }
 0x5e8   :  { %2732 = vrcp.f32 %v1119_v13  ;;  %v1120_v10 = vadd.f32 1.0, %v2729_v7  ;;  %v1498_v13 = vld [vmem:[#allocation7] sm:$0xff]  ;;  %v2525_v7 = vpack.c.bf16 %v1505_v12, %v1501_v56 }
 0x5e9   :  { %v1534_v56 = vld [vmem:[#allocation7 + $0x120] sm:$0xff] }
 0x5ea   :  { %2734 = vrcp.f32 %v1120_v10  ;;  %v2511_v12 = vpack.c.bf16 %v1534_v56, %v1530_v2 }
 0x5f1   :  { %v2731_v36 = vpop.eup %2730 }
 0x5f2   :  { %v1129_v6 = vmul.f32 %v2731_v36, %v2727_v48  ;;  %v2733_v50 = vpop.eup %2732  ;;  %v1502_v48 = vld [vmem:[#allocation7 + $0x20] sm:$0xff] }
 0x5f3   :  { %v1128_v25 = vmul.f32 %v2733_v50, %v3373_v37  ;;  %v2495_v36 = vpack.c.bf16 %v1502_v48, %v1498_v13  ;;  %v1504_v50 = vld [vmem:[#allocation7 + $0x30] sm:$0xff] }
 0x5f4   :  { %v2735_v60 = vpop.eup %2734  ;;  %v1532_v13 = vld [vmem:[#allocation7 + $0x110] sm:$0xff] }
 0x5f5   :  { %v3422_v33 = vadd.f32 %v1129_v6, %v1128_v25  ;;  %v1500_v6 = vld [vmem:[#allocation7 + $0x10] sm:$0xff]  ;;  %v1507_v25 = vld [vmem:[#allocation7 + $0x48] sm:$0xff] }
 0x5f6   :  { %v2527_v10 = vpack.c.bf16 %v1504_v50, %v1500_v6  ;;  %v1536_v48 = vld [vmem:[#allocation7 + $0x130] sm:$0xff]  ;;  %v1543_v6 = vld [vmem:[#allocation7 + $0x168] sm:$0xff]  ;;  %v1541_v50 = vld [vmem:[#allocation7 + $0x158] sm:$0xff] }
 0x5f7   :  { %2736 = vtanh.f32 %v3422_v33 }
 0x601   :  { %v2737_v8 = vpop.eup %2736 }
 0x602   :  { %v1132_v16 = vmul.f32 %v2737_v8, %v2735_v60  ;;  %v1509_v60 = vld [vmem:[#allocation7 + $0x58] sm:$0xff] }
 0x604   :  { %1210 = vmatmul.mubr.f32.vlgmr.msra.gmra.mrb[10].mxu0 %v1132_v16  ;;  %1281 = vmatmul.mubr.f32.vlgmr.msra.gmra.mrb[10].mxu1 %v1132_v16  ;;  %v1513_v16 = vld [vmem:[#allocation7 + $0x78] sm:$0xff] }
 0x605   :  { %2432 = vmatpush1.bf16.msra.mxu0 %v3026_v11  ;;  %2464 = vmatpush1.bf16.msra.mxu1 %v3029_v14  ;;  %v2907_v11 = vmov 7   ;;  %v1135_v14 = vpop.permute.xlu1 %1134 }
 0x606   :  { %2434 = vmatprep.subr.bf16.mxu0 %v3034_v18  ;;  %2466 = vmatprep.subr.bf16.mxu1 %v3036_v22  ;;  %v1137_v18 = vmul.f32 %v1135_v14, %v3143_v0  ;;  %v1138_v22 = vmul.f32 %v1135_v14, %v3217_v17 }
 0x607   :  { %1391 = vmatprep.mubr.f32.mxu0 %v3512_v39  ;;  %1462 = vmatprep.mubr.f32.mxu1 %v3512_v39 }
 0x608   :  { %2644 = vset.pattern.permute.xlu1 %v2907_v11  ;;  %2645 = vset.pattern.permute.xlu0 %v2907_v11  ;;  %v1506_v11 = vld [vmem:[#allocation7 + $0x40] sm:$0xff] }
 0x609   :  { %2436 = vmatpush1.bf16.msra.mxu0 %v3038_v23  ;;  %2468 = vmatpush1.bf16.msra.mxu1 %v3041_v26  ;;  %v1141_v23 = vadd.f32 %v1137_v18, %v3151_v5  ;;  %v1142_v26 = vadd.f32 %v1138_v22, %v3222_v27  ;;  %v2529_v18 = vpack.c.bf16 %v1513_v16, %v1509_v60  ;;  %v1542_v60 = vld [vmem:[#allocation7 + $0x160] sm:$0xff] }
 0x60a   :  { %2438 = vmatprep.subr.bf16.mxu0 %v3046_v30  ;;  %2470 = vmatprep.subr.bf16.mxu1 %v3048_v34 }
 0x60b   :  { %1316 = vperm.xlu1 %2644, %v3410_v46  }
 0x60d   :  { %2440 = vmatpush1.bf16.msra.mxu0 %v3050_v35  ;;  %2472 = vmatpush1.bf16.msra.mxu1 %v3055_v40  ;;  %v1139_v40 = vmul.f32 %v1135_v14, %v3147_v1 }
 0x60e   :  { %2442 = vmatprep.subr.bf16.mxu0 %v3059_v44  ;;  %2474 = vmatprep.subr.bf16.mxu1 %v3061_v45 }
 0x611   :  { %2444 = vmatpush1.bf16.msra.mxu0 %v3064_v49  ;;  %2476 = vmatpush1.bf16.msra.mxu1 %v3068_v53 }
 0x612   :  { %2446 = vmatprep.subr.bf16.mxu0 %v3070_v54  ;;  %2478 = vmatprep.subr.bf16.mxu1 %v3072_v58  ;;  %v1140_v58 = vmul.f32 %v1135_v14, %v3165_v19  ;;  %v1510_v14 = vld [vmem:[#allocation7 + $0x60] sm:$0xff] }
 0x613   :  { %v2499_v22 = vpack.c.bf16 %v1510_v14, %v1506_v11  ;;  %v1540_v11 = vld [vmem:[#allocation7 + $0x150] sm:$0xff] }
 0x614   :  { %v1544_v14 = vld [vmem:[#allocation7 + $0x170] sm:$0xff] }
 0x615   :  { %2448 = vmatpush1.bf16.msra.mxu0 %v3075_v62  ;;  %2480 = vmatpush1.bf16.msra.mxu1 %v3079_v3  ;;  %v1143_v62 = vadd.f32 %v1139_v40, %v3160_v15  ;;  %v1144_v3 = vadd.f32 %v1140_v58, %v3171_v28  ;;  %v1517_v40 = vld [vmem:[#allocation7 + $0x98] sm:$0xff] }
 0x616   :  { %2450 = vmatprep.subr.bf16.mxu0 %v3081_v4  ;;  %2482 = vmatprep.subr.bf16.mxu1 %v3084_v9 }
 0x619   :  { %2452 = vmatpush1.bf16.msra.mxu0 %v3087_v20  ;;  %2484 = vmatpush1.bf16.msra.mxu1 %v3091_v21 }
 0x61a   :  { %2454 = vmatprep.subr.bf16.mxu0 %v3093_v24  ;;  %2486 = vmatprep.subr.bf16.mxu1 %v3096_v29 }
 0x61d   :  { %2456 = vmatpush1.bf16.msra.mxu0 %v3099_v38  ;;  %2488 = vmatpush1.bf16.msra.mxu1 %v3103_v41 }
 0x61e   :  { %2458 = vmatprep.subr.bf16.mxu0 %v3105_v42  ;;  %2490 = vmatprep.subr.bf16.mxu1 %v3108_v47 }
 0x621   :  { %2460 = vmatpush1.bf16.msra.mxu0 %v3111_v51  ;;  %2492 = vmatpush1.bf16.msra.mxu1 %v3115_v52 }
 0x622   :  { %2494 = vmatprep.subr.bf16.mxu0 %v2493_v63  ;;  %2526 = vmatprep.subr.bf16.mxu1 %v2525_v7  ;;  %v2543_v7 = vpack.c.bf16 %v1536_v48, %v1532_v13 }
 0x6d7   :  { %v1211_v30 = vpop.f32.mrb[10].mxu0  ;;  %v1282_v34 = vpop.f32.mrb[10].mxu1 }
 0x6d8   :  { %v1287_v35 = vadd.f32 %v1211_v30, %v1141_v23  ;;  %v1213_v44 = vpop.f32.mrb[11].mxu0  ;;  %v1284_v45 = vpop.f32.mrb[11].mxu1  ;;  %v1289_v4 = vadd.f32 %v1282_v34, %v1143_v62  ;;  %v1508_v23 = vld [vmem:[#allocation7 + $0x50] sm:$0xff]  ;;  %v1515_v34 = vld [vmem:[#allocation7 + $0x88] sm:$0xff] }
 0x6d9   :  { %v1288_v49 = vadd.f32 %v1213_v44, %v1142_v26  ;;  %v1290_v9 = vadd.f32 %v1284_v45, %v1144_v3  ;;  %v1512_v26 = vld [vmem:[#allocation7 + $0x70] sm:$0xff]  ;;  %v1521_v45 = vld [vmem:[#allocation7 + $0xb8] sm:$0xff] }
 0x6da   :  { %v2032_v53 = vmul.f32 -1.442695, %v1287_v35  ;;  %v2034_v20 = vmul.f32 -1.442695, %v1289_v4  ;;  %v2531_v30 = vpack.c.bf16 %v1512_v26, %v1508_v23  ;;  %v1519_v35 = vld [vmem:[#allocation7 + $0xa8] sm:$0xff]  ;;  %v1516_v62 = vld [vmem:[#allocation7 + $0x90] sm:$0xff] }
 0x6db   :  { %v2033_v54 = vmul.f32 -1.442695, %v1288_v49  ;;  %v2501_v44 = vpack.c.bf16 %v1519_v35, %v1515_v34  ;;  %v1514_v49 = vld [vmem:[#allocation7 + $0x80] sm:$0xff]  ;;  %v1520_v3 = vld [vmem:[#allocation7 + $0xb0] sm:$0xff]  ;;  %v1551_v23 = vld [vmem:[#allocation7 + $0x1a8] sm:$0xff] }
 0x6dc   :  { %2738 = vpow2.f32 %v2032_v53  ;;  %v1518_v53 = vld [vmem:[#allocation7 + $0xa0] sm:$0xff]  ;;  %v2535_v4 = vpack.c.bf16 %v1520_v3, %v1516_v62  ;;  %v1549_v26 = vld [vmem:[#allocation7 + $0x198] sm:$0xff] }
 0x6dd   :  { %2740 = vpow2.f32 %v2033_v54  ;;  %v2533_v54 = vpack.c.bf16 %v1521_v45, %v1517_v40  ;;  %v2503_v58 = vpack.c.bf16 %v1518_v53, %v1514_v49  ;;  %v1546_v40 = vld [vmem:[#allocation7 + $0x180] sm:$0xff]  ;;  %v1548_v45 = vld [vmem:[#allocation7 + $0x190] sm:$0xff] }
 0x6de   :  { %2742 = vtanh.f32 %v1290_v9  ;;  %v1523_v9 = vld [vmem:[#allocation7 + $0xc8] sm:$0xff]  ;;  %v1552_v53 = vld [vmem:[#allocation7 + $0x1b0] sm:$0xff] }
 0x6df   :  { %2744 = vpow2.f32 %v2034_v20  ;;  %v1527_v20 = vld [vmem:[#allocation7 + $0xe8] sm:$0xff]  ;;  %v2551_v62 = vpack.c.bf16 %v1552_v53, %v1548_v45  ;;  %v1763_v45 = vld [vmem:[#allocation8 + $0x10] sm:$0xff] }
 0x6e6   :  { %v2739_v21 = vpop.eup %2738 }
 0x6e7   :  { %v1300_v24 = vadd.f32 1.0, %v2739_v21  ;;  %v2741_v29 = vpop.eup %2740  ;;  %v1525_v21 = vld [vmem:[#allocation7 + $0xd8] sm:$0xff] }
 0x6e8   :  { %v1301_v38 = vadd.f32 1.0, %v2741_v29  ;;  %v2743_v41 = vpop.eup %2742  ;;  %v1529_v29 = vld [vmem:[#allocation7 + $0xf8] sm:$0xff] }
 0x6e9   :  { %2746 = vrcp.f32 %v1300_v24  ;;  %v2745_v42 = vpop.eup %2744  ;;  %v2505_v24 = vpack.c.bf16 %v1527_v20, %v1523_v9  ;;  %v1561_v9 = vld [vmem:[#allocation7 + $0x1f8] sm:$0xff]  ;;  %v1554_v20 = vld [vmem:[#allocation7 + $0x1c0] sm:$0xff] }
 0x6ea   :  { %2748 = vrcp.f32 %v1301_v38  ;;  %v1302_v37 = vadd.f32 1.0, %v2745_v42  ;;  %v1522_v38 = vld [vmem:[#allocation7 + $0xc0] sm:$0xff]  ;;  %v2537_v42 = vpack.c.bf16 %v1529_v29, %v1525_v21  ;;  %v1556_v29 = vld [vmem:[#allocation7 + $0x1d0] sm:$0xff] }
 0x6ec   :  { %2750 = vrcp.f32 %v1302_v37 }
 0x6f3   :  { %v2747_v47 = vpop.eup %2746 }
 0x6f4   :  { %v1311_v51 = vmul.f32 %v2747_v47, %v2743_v41  ;;  %v2749_v52 = vpop.eup %2748  ;;  %v1526_v41 = vld [vmem:[#allocation7 + $0xe0] sm:$0xff] }
 0x6f5   :  { %v1310_v46 = vmul.f32 %v2749_v52, %v3422_v33  ;;  %v1511_v33 = vld [vmem:[#allocation7 + $0x68] sm:$0xff]  ;;  %v2507_v47 = vpack.c.bf16 %v1526_v41, %v1522_v38  ;;  %v1528_v52 = vld [vmem:[#allocation7 + $0xf0] sm:$0xff] }
 0x6f6   :  { %v2751_v32 = vpop.eup %2750  ;;  %v2497_v8 = vpack.c.bf16 %v1511_v33, %v1507_v25  ;;  %v1545_v25 = vld [vmem:[#allocation7 + $0x178] sm:$0xff]  ;;  %v1538_v33 = vld [vmem:[#allocation7 + $0x140] sm:$0xff]  ;;  %v1560_v38 = vld [vmem:[#allocation7 + $0x1f0] sm:$0xff] }
 0x6f7   :  { %v3467_v55 = vadd.f32 %v1311_v51, %v1310_v46  ;;  %v1524_v51 = vld [vmem:[#allocation7 + $0xd0] sm:$0xff]  ;;  %v1531_v46 = vld [vmem:[#allocation7 + $0x108] sm:$0xff]  ;;  %v2515_v16 = vpack.c.bf16 %v1542_v60, %v1538_v33 }
 0x6f8   :  { %v2539_v37 = vpack.c.bf16 %v1528_v52, %v1524_v51 }
 0x6f9   :  { %2752 = vtanh.f32 %v3467_v55 }
 0x703   :  { %v2753_v43 = vpop.eup %2752 }
 0x704   :  { %v1314_v31 = vmul.f32 %v2753_v43, %v2751_v32  ;;  %v1535_v32 = vld [vmem:[#allocation7 + $0x128] sm:$0xff]  ;;  %v1533_v43 = vld [vmem:[#allocation7 + $0x118] sm:$0xff] }
 0x705   :  { %v2541_v63 = vpack.c.bf16 %v1537_v57, %v1533_v43 }
 0x706   :  { %1392 = vmatmul.mubr.f32.vlgmr.msra.gmra.mrb[12].mxu0 %v1314_v31  ;;  %1463 = vmatmul.mubr.f32.vlgmr.msra.gmra.mrb[12].mxu1 %v1314_v31  ;;  %v2509_v31 = vpack.c.bf16 %v1535_v32, %v1531_v46 }
 0x707   :  { %1648 = vmatprep.mubr.f32.mxu0 %v3512_v39  ;;  %1719 = vmatprep.mubr.f32.mxu1 %v3512_v39 }
 0x708   :  { %2496 = vmatpush1.bf16.msra.mxu0 %v2495_v36  ;;  %2528 = vmatpush1.bf16.msra.mxu1 %v2527_v10  ;;  %v1539_v36 = vld [vmem:[#allocation7 + $0x148] sm:$0xff] }
 0x709   :  { %2498 = vmatprep.subr.bf16.mxu0 %v2497_v8  ;;  %2530 = vmatprep.subr.bf16.mxu1 %v2529_v18  ;;  %v2513_v10 = vpack.c.bf16 %v1543_v6, %v1539_v36  ;;  %v2545_v8 = vpack.c.bf16 %v1545_v25, %v1541_v50  ;;  %v1547_v18 = vld [vmem:[#allocation7 + $0x188] sm:$0xff] }
 0x70a   :  { %v2517_v34 = vpack.c.bf16 %v1551_v23, %v1547_v18  ;;  %v1766_v23 = vld [vmem:[#allocation8 + $0x28] sm:$0xff] }
 0x70c   :  { %2500 = vmatpush1.bf16.msra.mxu0 %v2499_v22  ;;  %2532 = vmatpush1.bf16.msra.mxu1 %v2531_v30  ;;  %v2547_v22 = vpack.c.bf16 %v1544_v14, %v1540_v11  ;;  %v1553_v30 = vld [vmem:[#allocation7 + $0x1b8] sm:$0xff] }
 0x70d   :  { %2502 = vmatprep.subr.bf16.mxu0 %v2501_v44  ;;  %2534 = vmatprep.subr.bf16.mxu1 %v2533_v54  ;;  %v2549_v35 = vpack.c.bf16 %v1553_v30, %v1549_v26  ;;  %v1550_v44 = vld [vmem:[#allocation7 + $0x1a0] sm:$0xff]  ;;  %v1555_v54 = vld [vmem:[#allocation7 + $0x1c8] sm:$0xff]  ;;  %v1764_v26 = vld [vmem:[#allocation8 + $0x18] sm:$0xff] }
 0x70e   :  { %v2519_v49 = vpack.c.bf16 %v1550_v44, %v1546_v40 }
 0x710   :  { %2504 = vmatpush1.bf16.msra.mxu0 %v2503_v58  ;;  %2536 = vmatpush1.bf16.msra.mxu1 %v2535_v4  ;;  %v1559_v58 = vld [vmem:[#allocation7 + $0x1e8] sm:$0xff]  ;;  %v1557_v4 = vld [vmem:[#allocation7 + $0x1d8] sm:$0xff] }
 0x711   :  { %2506 = vmatprep.subr.bf16.mxu0 %v2505_v24  ;;  %2538 = vmatprep.subr.bf16.mxu1 %v2537_v42  ;;  %v2521_v3 = vpack.c.bf16 %v1559_v58, %v1555_v54  ;;  %v2553_v21 = vpack.c.bf16 %v1561_v9, %v1557_v4  ;;  %v1558_v24 = vld [vmem:[#allocation7 + $0x1e0] sm:$0xff]  ;;  %v2555_v42 = vpack.c.bf16 %v1560_v38, %v1556_v29  ;;  %v1770_v54 = vld [vmem:[#allocation8 + $0x48] sm:$0xff]  ;;  %v1775_v29 = vld [vmem:[#allocation8 + $0x70] sm:$0xff] }
 0x712   :  { %v2523_v41 = vpack.c.bf16 %v1558_v24, %v1554_v20  ;;  %v1774_v58 = vld [vmem:[#allocation8 + $0x68] sm:$0xff]  ;;  %v1769_v4 = vld [vmem:[#allocation8 + $0x40] sm:$0xff]  ;;  %v1771_v24 = vld [vmem:[#allocation8 + $0x50] sm:$0xff] }
 0x713   :  { %v1773_v9 = vld [vmem:[#allocation8 + $0x60] sm:$0xff]  ;;  %v2595_v38 = vpack.c.bf16 %v1775_v29, %v1771_v24  ;;  %v1818_v24 = vld [vmem:[#allocation8 + $0x1c8] sm:$0xff] }
 0x714   :  { %2508 = vmatpush1.bf16.msra.mxu0 %v2507_v47  ;;  %2540 = vmatpush1.bf16.msra.mxu1 %v2539_v37  ;;  %v1317_v47 = vpop.permute.xlu1 %1316  ;;  %v1822_v29 = vld [vmem:[#allocation8 + $0x1e8] sm:$0xff] }
 0x715   :  { %2510 = vmatprep.subr.bf16.mxu0 %v2509_v31  ;;  %2542 = vmatprep.subr.bf16.mxu1 %v2541_v63  ;;  %v1319_v51 = vmul.f32 %v1317_v47, %v3143_v0  ;;  %v1320_v52 = vmul.f32 %v1317_v47, %v3217_v17  ;;  %v1321_v57 = vmul.f32 %v1317_v47, %v3147_v1 }
 0x716   :  { %v1322_v48 = vmul.f32 %v1317_v47, %v3165_v19  ;;  %v1780_v47 = vld [vmem:[#allocation8 + $0x98] sm:$0xff] }
 0x717   :  { %v1323_v37 = vadd.f32 %v1319_v51, %v3151_v5  ;;  %v1324_v46 = vadd.f32 %v1320_v52, %v3222_v27  ;;  %v1325_v0 = vadd.f32 %v1321_v57, %v3160_v15  ;;  %v1784_v52 = vld [vmem:[#allocation8 + $0xb8] sm:$0xff]  ;;  %v1783_v57 = vld [vmem:[#allocation8 + $0xb0] sm:$0xff] }
 0x718   :  { %2512 = vmatpush1.bf16.msra.mxu0 %v2511_v12  ;;  %2544 = vmatpush1.bf16.msra.mxu1 %v2543_v7  ;;  %v1326_v5 = vadd.f32 %v1322_v48, %v3171_v28  ;;  %v1792_v48 = vld [vmem:[#allocation8 + $0xf8] sm:$0xff] }
 0x719   :  { %2514 = vmatprep.subr.bf16.mxu0 %v2513_v10  ;;  %2546 = vmatprep.subr.bf16.mxu1 %v2545_v8 }
 0x71c   :  { %2516 = vmatpush1.bf16.msra.mxu0 %v2515_v16  ;;  %2548 = vmatpush1.bf16.msra.mxu1 %v2547_v22  ;;  %v1762_v22 = vld [vmem:[#allocation8 + $0x8] sm:$0xff] }
 0x71d   :  { %2518 = vmatprep.subr.bf16.mxu0 %v2517_v34  ;;  %2550 = vmatprep.subr.bf16.mxu1 %v2549_v35  ;;  %v2557_v30 = vpack.c.bf16 %v1766_v23, %v1762_v22  ;;  %v1768_v34 = vld [vmem:[#allocation8 + $0x38] sm:$0xff]  ;;  %v1761_v35 = vld [vmem:[#allocation8] sm:$0xff] }
 0x71e   :  { %v2589_v40 = vpack.c.bf16 %v1768_v34, %v1764_v26  ;;  %v1804_v22 = vld [vmem:[#allocation8 + $0x158] sm:$0xff]  ;;  %v1805_v34 = vld [vmem:[#allocation8 + $0x160] sm:$0xff] }
 0x71f   :  { %v1808_v26 = vld [vmem:[#allocation8 + $0x178] sm:$0xff] }
 0x720   :  { %2520 = vmatpush1.bf16.msra.mxu0 %v2519_v49  ;;  %2552 = vmatpush1.bf16.msra.mxu1 %v2551_v62  ;;  %v1767_v49 = vld [vmem:[#allocation8 + $0x30] sm:$0xff]  ;;  %v1772_v62 = vld [vmem:[#allocation8 + $0x58] sm:$0xff] }
 0x721   :  { %2522 = vmatprep.subr.bf16.mxu0 %v2521_v3  ;;  %2554 = vmatprep.subr.bf16.mxu1 %v2553_v21  ;;  %v2591_v53 = vpack.c.bf16 %v1767_v49, %v1763_v45  ;;  %v1776_v3 = vld [vmem:[#allocation8 + $0x78] sm:$0xff]  ;;  %v2563_v21 = vpack.c.bf16 %v1773_v9, %v1769_v4  ;;  %v1810_v45 = vld [vmem:[#allocation8 + $0x188] sm:$0xff]  ;;  %v1813_v4 = vld [vmem:[#allocation8 + $0x1a0] sm:$0xff] }
 0x722   :  { %v2593_v20 = vpack.c.bf16 %v1776_v3, %v1772_v62  ;;  %v1809_v3 = vld [vmem:[#allocation8 + $0x180] sm:$0xff]  ;;  %v1811_v9 = vld [vmem:[#allocation8 + $0x190] sm:$0xff] }
 0x724   :  { %2524 = vmatpush1.bf16.msra.mxu0 %v2523_v41  ;;  %2556 = vmatpush1.bf16.msra.mxu1 %v2555_v42  ;;  %v1778_v41 = vld [vmem:[#allocation8 + $0x88] sm:$0xff] }
 0x725   :  { %2558 = vmatprep.subr.bf16.mxu0 %v2557_v30  ;;  %2590 = vmatprep.subr.bf16.mxu1 %v2589_v40  ;;  %v1782_v42 = vld [vmem:[#allocation8 + $0xa8] sm:$0xff]  ;;  %v1801_v30 = vld [vmem:[#allocation8 + $0x140] sm:$0xff]  ;;  %v1803_v40 = vld [vmem:[#allocation8 + $0x150] sm:$0xff] }
 0x726   :  { %v2565_v51 = vpack.c.bf16 %v1782_v42, %v1778_v41  ;;  %v2585_v41 = vpack.c.bf16 %v1822_v29, %v1818_v24  ;;  %v1820_v42 = vld [vmem:[#allocation8 + $0x1d8] sm:$0xff] }
 0x7d9   :  { %v1393_v32 = vpop.f32.mrb[12].mxu0  ;;  %v1464_v43 = vpop.f32.mrb[12].mxu1 }
 0x7da   :  { %v1469_v31 = vadd.f32 %v1393_v32, %v1323_v37  ;;  %v1395_v2 = vpop.f32.mrb[13].mxu0  ;;  %v1466_v56 = vpop.f32.mrb[13].mxu1  ;;  %v1471_v17 = vadd.f32 %v1464_v43, %v1325_v0  ;;  %v1777_v37 = vld [vmem:[#allocation8 + $0x80] sm:$0xff]  ;;  %v2597_v32 = vpack.c.bf16 %v1784_v52, %v1780_v47  ;;  %v1824_v47 = vld [vmem:[#allocation8 + $0x1f8] sm:$0xff] }
 0x7db   :  { %v1470_v63 = vadd.f32 %v1395_v2, %v1324_v46  ;;  %v1472_v27 = vadd.f32 %v1466_v56, %v1326_v5  ;;  %v1781_v46 = vld [vmem:[#allocation8 + $0xa0] sm:$0xff]  ;;  %v1786_v56 = vld [vmem:[#allocation8 + $0xc8] sm:$0xff]  ;;  %v2617_v52 = vpack.c.bf16 %v1824_v47, %v1820_v42 }
 0x7dc   :  { %v2035_v12 = vmul.f32 -1.442695, %v1469_v31  ;;  %v2037_v7 = vmul.f32 -1.442695, %v1471_v17  ;;  %v2567_v43 = vpack.c.bf16 %v1781_v46, %v1777_v37  ;;  %v1779_v31 = vld [vmem:[#allocation8 + $0x90] sm:$0xff]  ;;  %v1785_v0 = vld [vmem:[#allocation8 + $0xc0] sm:$0xff] }
 0x7dd   :  { %v2036_v13 = vmul.f32 -1.442695, %v1470_v63  ;;  %v2599_v2 = vpack.c.bf16 %v1783_v57, %v1779_v31  ;;  %v1790_v63 = vld [vmem:[#allocation8 + $0xe8] sm:$0xff]  ;;  %v1789_v5 = vld [vmem:[#allocation8 + $0xe0] sm:$0xff]  ;;  %v1819_v46 = vld [vmem:[#allocation8 + $0x1d0] sm:$0xff] }
 0x7de   :  { %2754 = vpow2.f32 %v2035_v12  ;;  %v1788_v12 = vld [vmem:[#allocation8 + $0xd8] sm:$0xff]  ;;  %v1821_v37 = vld [vmem:[#allocation8 + $0x1e0] sm:$0xff] }
 0x7df   :  { %2756 = vpow2.f32 %v2036_v13  ;;  %v2569_v13 = vpack.c.bf16 %v1790_v63, %v1786_v56  ;;  %v2601_v17 = vpack.c.bf16 %v1792_v48, %v1788_v12  ;;  %v1562_v57 = vld [vmem:[%s3502_s6] sm:$0xf] }
 0x7e0   :  { %2758 = vtanh.f32 %v1472_v27  ;;  %v2571_v27 = vpack.c.bf16 %v1789_v5, %v1785_v0 }
 0x7e1   :  { %2760 = vpow2.f32 %v2037_v7  ;;  %v1787_v7 = vld [vmem:[#allocation8 + $0xd0] sm:$0xff] }
 0x7e8   :  { %v2755_v36 = vpop.eup %2754 }
 0x7e9   :  { %v1482_v6 = vadd.f32 1.0, %v2755_v36  ;;  %v2757_v1 = vpop.eup %2756  ;;  %v1791_v36 = vld [vmem:[#allocation8 + $0xf0] sm:$0xff] }
 0x7ea   :  { %v1483_v50 = vadd.f32 1.0, %v2757_v1  ;;  %v2759_v10 = vpop.eup %2758  ;;  %v1794_v1 = vld [vmem:[#allocation8 + $0x108] sm:$0xff] }
 0x7eb   :  { %2762 = vrcp.f32 %v1482_v6  ;;  %v2761_v25 = vpop.eup %2760  ;;  %v2603_v6 = vpack.c.bf16 %v1791_v36, %v1787_v7  ;;  %v3513_v7 = vld [vmem:[#allocation13_spill] sm:$0xff] }
 0x7ec   :  { %2764 = vrcp.f32 %v1483_v50  ;;  %v1484_v15 = vadd.f32 1.0, %v2761_v25  ;;  %v1798_v50 = vld [vmem:[#allocation8 + $0x128] sm:$0xff]  ;;  %v1579_v36 = vrot.slane %v1562_v57, %v3513_v7 }
 0x7ed   :  { %v2573_v25 = vpack.c.bf16 %v1798_v50, %v1794_v1 }
 0x7ee   :  { %2766 = vrcp.f32 %v1484_v15 }
 0x7f5   :  { %v2763_v19 = vpop.eup %2762 }
 0x7f6   :  { %v1493_v33 = vmul.f32 %v2763_v19, %v2759_v10  ;;  %v2765_v60 = vpop.eup %2764  ;;  %v1796_v10 = vld [vmem:[#allocation8 + $0x118] sm:$0xff] }
 0x7f7   :  { %v1492_v8 = vmul.f32 %v2765_v60, %v3467_v55  ;;  %v1765_v55 = vld [vmem:[#allocation8 + $0x20] sm:$0xff]  ;;  %v1800_v19 = vld [vmem:[#allocation8 + $0x138] sm:$0xff] }
 0x7f8   :  { %v2767_v16 = vpop.eup %2766  ;;  %v2559_v44 = vpack.c.bf16 %v1765_v55, %v1761_v35  ;;  %v1797_v60 = vld [vmem:[#allocation8 + $0x120] sm:$0xff]  ;;  %v2605_v15 = vpack.c.bf16 %v1800_v19, %v1796_v10  ;;  %v2609_v35 = vpack.c.bf16 %v1808_v26, %v1804_v22  ;;  %v2579_v55 = vpack.c.bf16 %v1805_v34, %v1801_v30 }
 0x7f9   :  { %v1494_v28 = vadd.f32 %v1493_v33, %v1492_v8  ;;  %v1793_v33 = vld [vmem:[#allocation8 + $0x100] sm:$0xff] }
 0x7fa   :  { %v2575_v8 = vpack.c.bf16 %v1797_v60, %v1793_v33 }
 0x7fb   :  { %2768 = vtanh.f32 %v1494_v28  ;;  %v1795_v28 = vld [vmem:[#allocation8 + $0x110] sm:$0xff] }
 0x805   :  { %v2769_v11 = vpop.eup %2768 }
 0x806   :  { %v1496_v14 = vmul.f32 %v2769_v11, %v2767_v16  ;;  %v1799_v16 = vld [vmem:[#allocation8 + $0x130] sm:$0xff] }
 0x807   :  { %v2607_v11 = vpack.c.bf16 %v1799_v16, %v1795_v28 }
 0x808   :  { %v1497_v18 = vmax.f32 %v1496_v14, 0.0  ;;  %v1802_v14 = vld [vmem:[#allocation8 + $0x148] sm:$0xff] }
 0x80a   :  { %1649 = vmatmul.mubr.f32.vlgmr.msra.gmra.mrb[14].mxu0 %v1497_v18  ;;  %1720 = vmatmul.mubr.f32.vlgmr.msra.gmra.mrb[14].mxu1 %v1497_v18  ;;  %v1806_v18 = vld [vmem:[#allocation8 + $0x168] sm:$0xff] }
 0x80b   :  { %1889 = vmatprep.mubr.f32.mxu0 %v3512_v39  ;;  %1960 = vmatprep.mubr.f32.mxu1 %v3512_v39  ;;  %v2561_v39 = vpack.c.bf16 %v1774_v58, %v1770_v54  ;;  %v2577_v23 = vpack.c.bf16 %v1806_v18, %v1802_v14  ;;  %v1812_v54 = vld [vmem:[#allocation8 + $0x198] sm:$0xff] }
 0x80c   :  { %2560 = vmatpush1.bf16.msra.mxu0 %v2559_v44  ;;  %2592 = vmatpush1.bf16.msra.mxu1 %v2591_v53  ;;  %v1807_v44 = vld [vmem:[#allocation8 + $0x170] sm:$0xff]  ;;  %v1814_v53 = vld [vmem:[#allocation8 + $0x1a8] sm:$0xff]  ;;  %v1816_v58 = vld [vmem:[#allocation8 + $0x1b8] sm:$0xff] }
 0x80d   :  { %2562 = vmatprep.subr.bf16.mxu0 %v2561_v39  ;;  %2594 = vmatprep.subr.bf16.mxu1 %v2593_v20  ;;  %v2611_v49 = vpack.c.bf16 %v1807_v44, %v1803_v40  ;;  %v2581_v62 = vpack.c.bf16 %v1814_v53, %v1810_v45  ;;  %v2613_v39 = vpack.c.bf16 %v1816_v58, %v1812_v54 }
 0x80e   :  { %v2583_v20 = vpack.c.bf16 %v1813_v4, %v1809_v3 }
 0x810   :  { %2564 = vmatpush1.bf16.msra.mxu0 %v2563_v21  ;;  %2596 = vmatpush1.bf16.msra.mxu1 %v2595_v38  ;;  %v1815_v21 = vld [vmem:[#allocation8 + $0x1b0] sm:$0xff] }
 0x811   :  { %2566 = vmatprep.subr.bf16.mxu0 %v2565_v51  ;;  %2598 = vmatprep.subr.bf16.mxu1 %v2597_v32  ;;  %v2615_v38 = vpack.c.bf16 %v1815_v21, %v1811_v9  ;;  %v1817_v51 = vld [vmem:[#allocation8 + $0x1c0] sm:$0xff]  ;;  %v1823_v32 = vld [vmem:[#allocation8 + $0x1f0] sm:$0xff] }
 0x812   :  { %v2619_v31 = vpack.c.bf16 %v1823_v32, %v1819_v46 }
 0x814   :  { %2568 = vmatpush1.bf16.msra.mxu0 %v2567_v43  ;;  %2600 = vmatpush1.bf16.msra.mxu1 %v2599_v2  ;;  %v2587_v43 = vpack.c.bf16 %v1821_v37, %v1817_v51  ;;  %v1567_v2 = vrot.slane %v1562_v57, %v3126_v59 }
 0x815   :  { %2570 = vmatprep.subr.bf16.mxu0 %v2569_v13  ;;  %2602 = vmatprep.subr.bf16.mxu1 %v2601_v17  ;;  %v1575_v13 = vrot.slane %v1562_v57, %v3134_v61 }
 0x818   :  { %2572 = vmatpush1.bf16.msra.mxu0 %v2571_v27  ;;  %2604 = vmatpush1.bf16.msra.mxu1 %v2603_v6 }
 0x819   :  { %2574 = vmatprep.subr.bf16.mxu0 %v2573_v25  ;;  %2606 = vmatprep.subr.bf16.mxu1 %v2605_v15 }
 0x81c   :  { %2576 = vmatpush1.bf16.msra.mxu0 %v2575_v8  ;;  %2608 = vmatpush1.bf16.msra.mxu1 %v2607_v11  ;;  %v2040_v8 = vld [vmem:[%s3503_s7] ss:$0 sm:$0xff]  ;;  %v3514_v11 = vld [vmem:[#allocation14_spill] sm:$0xff]  ;;  %s2908_s7 = smov 1  }
 0x81d   :  { %2578 = vmatprep.subr.bf16.mxu0 %v2577_v23  ;;  %2610 = vmatprep.subr.bf16.mxu1 %v2609_v35  ;;  %v1571_v14 = vrot.slane %v1562_v57, %v3514_v11 }
 0x820   :  { %2580 = vmatpush1.bf16.msra.mxu0 %v2579_v55  ;;  %2612 = vmatpush1.bf16.msra.mxu1 %v2611_v49 }
 0x821   :  { %2582 = vmatprep.subr.bf16.mxu0 %v2581_v62  ;;  %2614 = vmatprep.subr.bf16.mxu1 %v2613_v39 }
 0x824   :  { %2584 = vmatpush1.bf16.msra.mxu0 %v2583_v20  ;;  %2616 = vmatpush1.bf16.msra.mxu1 %v2615_v38 }
 0x825   :  { %2586 = vmatprep.subr.bf16.mxu0 %v2585_v41  ;;  %2618 = vmatprep.subr.bf16.mxu1 %v2617_v52  ;;  %v2041_v52 = vld [vmem:[#allocation2] ss:$0 sm:$0xff] }
 0x828   :  { %2588 = vmatpush1.bf16.msra.mxu0 %v2587_v43  ;;  %2620 = vmatpush1.bf16.msra.mxu1 %v2619_v31 }
 0x8dd   :  { %v1650_v56 = vpop.f32.mrb[14].mxu0  ;;  %v1721_v63 = vpop.f32.mrb[14].mxu1 }
 0x8de   :  { %v1651_v12 = vadd.f32 %v1650_v56, %v1567_v2  ;;  %v1652_v48 = vpop.f32.mrb[15].mxu0  ;;  %v1723_v0 = vpop.f32.mrb[15].mxu1  ;;  %v1722_v17 = vadd.f32 %v1721_v63, %v1575_v13 }
 0x8df   :  { %v1724_v6 = vadd.f32 %v1723_v0, %v1579_v36  ;;  %v1653_v18 = vadd.f32 %v1652_v48, %v1571_v14 }
 0x8e0   :  { %v2038_v5 = vmul.f32 -1.442695, %v1651_v12  ;;  %v2039_v27 = vmul.f32 -1.442695, %v1722_v17 }
 0x8e2   :  { %2770 = vpow2.f32 %v2038_v5 }
 0x8e3   :  { %2772 = vpow2.f32 %v2039_v27 }
 0x8e4   :  { %2774 = vtanh.f32 %v1724_v6 }
 0x8ec   :  { %v2771_v1 = vpop.eup %2770 }
 0x8ed   :  { %v1731_v50 = vadd.f32 1.0, %v2771_v1  ;;  %v2773_v59 = vpop.eup %2772 }
 0x8ee   :  { %v1737_v10 = vadd.f32 1.0, %v2773_v59  ;;  %v2775_v25 = vpop.eup %2774 }
 0x8ef   :  { %2776 = vrcp.f32 %v1731_v50 }
 0x8f0   :  { %2778 = vrcp.f32 %v1737_v10 }
 0x8f9   :  { %v2777_v19 = vpop.eup %2776 }
 0x8fa   :  { %v1741_v33 = vmul.f32 %v2777_v19, %v2775_v25  ;;  %v2779_v61 = vpop.eup %2778 }
 0x8fc   :  { %2780 = vtanh.f32 %v1741_v33 }
 0x906   :  { %v2781_v60 = vpop.eup %2780 }
 0x907   :  { %v1743_v15 = vmul.f32 %v2781_v60, %v2779_v61 }
 0x909   :  { %1890 = vmatmul.mubr.f32.vlgmr.msra.gmra.mrb[16].mxu0 %v1743_v15  ;;  %1961 = vmatmul.mubr.f32.vlgmr.msra.gmra.mrb[16].mxu1 %v1743_v15  ;;  %v1744_v28 = vmax.f32 %v1743_v15, 0.0 }
 0x90b   :  { %v1751_v16 = vmul.f32 %v2040_v8, %v1744_v28 }
 0x90d   :  { %1752 = vadd.xlane.f32.xlu1 %v1751_v16 }
 0x99a   :  { %v1753_v32 = vpop.xlane.xlu1 %1752 }
 0x99b   :  { %v1760_v43 = vadd.f32 %v2041_v52, %v1753_v32 }
 0x9dc   :  { %v1891_v22 = vpop.f32.mrb[16].mxu0  ;;  %v1962_v23 = vpop.f32.mrb[16].mxu1 }
 0x9dd   :  { %v1967_v26 = vadd.f32 %v1891_v22, %v1651_v12  ;;  %v1893_v30 = vpop.f32.mrb[17].mxu0  ;;  %v1964_v34 = vpop.f32.mrb[17].mxu1  ;;  %v1969_v44 = vadd.f32 %v1962_v23, %v1722_v17 }
 0x9de   :  { %v1968_v35 = vadd.f32 %v1893_v30, %v1653_v18  ;;  %v1970_v45 = vadd.f32 %v1964_v34, %v1724_v6 }
 0x9df   :  { %v2042_v55 = vmul.f32 -1.442695, %v1967_v26  ;;  %v2044_v49 = vmul.f32 -1.442695, %v1969_v44 }
 0x9e0   :  { %v2043_v40 = vmul.f32 -1.442695, %v1968_v35 }
 0x9e1   :  { %2782 = vpow2.f32 %v2042_v55 }
 0x9e2   :  { %2784 = vpow2.f32 %v2043_v40 }
 0x9e3   :  { %2786 = vtanh.f32 %v1970_v45 }
 0x9e4   :  { %2788 = vpow2.f32 %v2044_v49 }
 0x9eb   :  { %v2783_v53 = vpop.eup %2782 }
 0x9ec   :  { %v1980_v54 = vadd.f32 1.0, %v2783_v53  ;;  %v2785_v58 = vpop.eup %2784 }
 0x9ed   :  { %v1981_v62 = vadd.f32 1.0, %v2785_v58  ;;  %v2787_v39 = vpop.eup %2786 }
 0x9ee   :  { %2790 = vrcp.f32 %v1980_v54  ;;  %v2789_v3 = vpop.eup %2788 }
 0x9ef   :  { %2792 = vrcp.f32 %v1981_v62  ;;  %v1982_v21 = vadd.f32 1.0, %v2789_v3 }
 0x9f1   :  { %2794 = vrcp.f32 %v1982_v21 }
 0x9f8   :  { %v2791_v4 = vpop.eup %2790 }
 0x9f9   :  { %v1991_v9 = vmul.f32 %v2791_v4, %v2787_v39  ;;  %v2793_v20 = vpop.eup %2792 }
 0x9fa   :  { %v1990_v24 = vmul.f32 %v2793_v20, %v1741_v33 }
 0x9fb   :  { %v2795_v38 = vpop.eup %2794 }
 0x9fc   :  { %v1992_v29 = vadd.f32 %v1991_v9, %v1990_v24 }
 0x9fe   :  { %2796 = vtanh.f32 %v1992_v29 }
 0xa08   :  { %v2797_v41 = vpop.eup %2796 }
 0xa09   :  { %v1994_v42 = vmul.f32 %v2797_v41, %v2795_v38 }
 0xa0b   :  { %v1995_v47 = vmax.f32 %v1994_v42, 0.0 }
 0xa0d   :  { %v1996_v51 = vmul.f32 %v2040_v8, %v1995_v47 }
 0xa0f   :  { %1997 = vadd.xlane.f32.xlu0 %v1996_v51 }
 0xa9c   :  { %v1998_v37 = vpop.xlane.xlu0 %1997 }
 0xa9d   :  { %v1999_v46 = vadd.f32 %v2041_v52, %v1998_v37 }
 0xa9f   :  { %2001 = vrot.lane.b32.xlu0 %v1999_v46, %s2908_s7 }
 0xb11   :  { %v2002_v31 = vpop.permute.xlu0 %2001 }
 0xb12   :  { %v2005_v57 = vsel %vm2004_vm0, %v1760_v43, %v2002_v31 }
 0xb13   :  { %2007 = vst.msk [vmem:[%s3505_s9] sm:$0xff] %vm2006_vm1, %v2005_v57 }
 0xb14   :  { %2012 = vsyncpa [#allocation4], 1 }
 0xb15   :  { %2013 = vsyncpa [#allocation6], 1 }
 0xb16   :  { %2014 = vsyncpa [#allocation9], 1 }

</bundles_post_ra>
